<compile_context>
chip_gen: v5e
topology: v5e:2x2
jax: 0.10.0
libtpu: 0.0.40
codegen_flags: <defaults>
</compile_context>

<pallas_src>
import numpy as np

import jax
import jax.numpy as jnp
from jax.experimental import pallas as pl
from jax.experimental.pallas import tpu as pltpu

LANE = 128


def _round_up(n, m):
    return ((n + m - 1) // m) * m


def _pad2(a, rows, cols):
    return jnp.pad(a, ((0, rows - a.shape[0]), (0, cols - a.shape[1])))


def vae_kernel(
    x_ref, eps_ref,
    w1_ref, b1_ref, w2_ref, b2_ref,
    wh_ref, bh_ref,
    wd1_ref, bd1_ref, wd2_ref, bd2_ref, wd3_ref, bd3_ref,
    recon_ref, ml_ref,
):
    lat_pad = eps_ref.shape[-1]
    cdt = w1_ref.dtype  # dtype fed to the MXU (f32 or bf16); accumulate stays f32

    x = x_ref[...].astype(cdt)

    # ---- encoder: Linear -> ReLU -> Linear -> ReLU ----
    h = jnp.dot(x, w1_ref[...], preferred_element_type=jnp.float32) + b1_ref[...]
    h = jnp.maximum(h, 0.0)
    h = jnp.dot(h.astype(cdt), w2_ref[...], preferred_element_type=jnp.float32) + b2_ref[...]
    h = jnp.maximum(h, 0.0)

    # ---- fused mu|logvar head: one [hid_pad, 2*lat_pad] matmul, one wide store ----
    ml = jnp.dot(h.astype(cdt), wh_ref[...], preferred_element_type=jnp.float32) + bh_ref[...]
    mu = ml[:, :lat_pad]          # lane slice at a 128 boundary (cheap)
    logvar = ml[:, lat_pad:]

    # ---- reparameterize: z = mu + eps * exp(0.5 * logvar) ----
    # Padded latent lanes: mu=0, logvar=0, eps=0 -> z=0 (and wd1 padded rows are
    # zero), so padding never leaks into real outputs.
    z = mu + eps_ref[...] * jnp.exp(0.5 * logvar)

    # ---- decoder: Linear -> ReLU -> Linear -> ReLU -> Linear -> Sigmoid ----
    d = jnp.dot(z.astype(cdt), wd1_ref[...], preferred_element_type=jnp.float32) + bd1_ref[...]
    d = jnp.maximum(d, 0.0)
    d = jnp.dot(d.astype(cdt), wd2_ref[...], preferred_element_type=jnp.float32) + bd2_ref[...]
    d = jnp.maximum(d, 0.0)
    d = jnp.dot(d.astype(cdt), wd3_ref[...], preferred_element_type=jnp.float32) + bd3_ref[...]

    recon_ref[...] = jax.nn.sigmoid(d).astype(recon_ref.dtype)
    ml_ref[...] = ml.astype(ml_ref.dtype)


def prepare_params(params, *, weight_dtype=jnp.float32):
    """One-time padding/cast of all weights to 128-lane multiples.

    Hoisted out of vae_forward so repeated forward calls do not re-stream the
    whole weight set through HBM just to pad it. Biases stay f32 (added after
    the f32 accumulation). mu/logvar weights are padded separately and then
    concatenated so the split point lands on a 128-lane boundary.
    """
    input_dim, hidden_dim = params["w1"].shape
    latent_dim = params["wmu"].shape[1]

    in_pad = _round_up(input_dim, LANE)
    hid_pad = _round_up(hidden_dim, LANE)
    lat_pad = _round_up(latent_dim, LANE)
    wdt = weight_dtype

    w1 = _pad2(params["w1"], in_pad, hid_pad).astype(wdt)
    b1 = _pad2(params["b1"], 1, hid_pad)
    w2 = _pad2(params["w2"], hid_pad, hid_pad).astype(wdt)
    b2 = _pad2(params["b2"], 1, hid_pad)
    wh = jnp.concatenate([_pad2(params["wmu"], hid_pad, lat_pad),
                          _pad2(params["wlv"], hid_pad, lat_pad)], axis=1).astype(wdt)
    bh = jnp.concatenate([_pad2(params["bmu"], 1, lat_pad),
                          _pad2(params["blv"], 1, lat_pad)], axis=1)
    wd1 = _pad2(params["wd1"], lat_pad, hid_pad).astype(wdt)
    bd1 = _pad2(params["bd1"], 1, hid_pad)
    wd2 = _pad2(params["wd2"], hid_pad, hid_pad).astype(wdt)
    bd2 = _pad2(params["bd2"], 1, hid_pad)
    wd3 = _pad2(params["wd3"], hid_pad, in_pad).astype(wdt)
    bd3 = _pad2(params["bd3"], 1, in_pad)

    args = (w1, b1, w2, b2, wh, bh, wd1, bd1, wd2, bd2, wd3, bd3)
    jax.block_until_ready(args)   # materialize once, reuse across calls
    return {
        "args": args,
        "dims": (input_dim, hidden_dim, latent_dim),
        "pads": (in_pad, hid_pad, lat_pad),
        "weight_dtype": wdt,
    }


def vae_forward(x, eps, prepared, *, tile_b=None, io_dtype=jnp.float32):
    """Fused VAE forward. `prepared` comes from prepare_params()."""
    B, input_dim = x.shape
    latent_dim = eps.shape[1]
    p_in, _, p_lat = prepared["dims"]
    assert (input_dim, latent_dim) == (p_in, p_lat)
    in_pad, hid_pad, lat_pad = prepared["pads"]
    param_args = prepared["args"]

    # ---- batch tile selection ----
    # 256 rows fills the v6e/v7x MXU M dim; for mid-size batches force >= 2 grid
    # steps so v7x's two TensorCores both get work ("parallel" axis). On v5e a
    # caller can pass tile_b=128 (its MXU is 4x128x128, M=128 already fills it).
    if tile_b is None:
        if B >= 512:
            tile_b = 256
        elif B >= 32:
            tile_b = min(256, _round_up(pl.cdiv(B, 2), 8))
        else:
            tile_b = max(_round_up(B, 8), 8)
    assert tile_b % 8 == 0
    grid_b = pl.cdiv(B, tile_b)
    B_pad = grid_b * tile_b   # zero-pad ragged batches instead of asserting

    io_itemsize = np.dtype(io_dtype).itemsize
    xp = _pad2(x.astype(io_dtype), B_pad, in_pad)
    epsp = _pad2(eps.astype(jnp.float32), B_pad, lat_pad)

    def batch_spec(feat):
        return pl.BlockSpec((tile_b, feat), lambda i: (i, 0))

    out_shape = (
        jax.ShapeDtypeStruct((B_pad, in_pad), io_dtype),        # reconstruction (padded)
        jax.ShapeDtypeStruct((B_pad, 2 * lat_pad), jnp.float32),  # packed mu | logvar
    )

    # ---- cost / VMEM budgets (from actual padded sizes) ----
    param_bytes = sum(int(a.size) * a.dtype.itemsize for a in param_args)
    flops = 2 * B_pad * (in_pad * hid_pad + 2 * hid_pad * hid_pad
                         + hid_pad * 2 * lat_pad + lat_pad * hid_pad
                         + hid_pad * in_pad)
    transcendentals = B_pad * (in_pad + lat_pad)   # sigmoid + exp(0.5*logvar)
    bytes_accessed = (B_pad * in_pad * io_itemsize          # x in
                      + B_pad * lat_pad * 4                 # eps in
                      + param_bytes                         # weights/biases
                      + B_pad * in_pad * io_itemsize        # recon out
                      + B_pad * 2 * lat_pad * 4)            # mu|logvar out
    cost = pl.CostEstimate(flops=int(flops),
                           transcendentals=int(transcendentals),
                           bytes_accessed=int(bytes_accessed))

    # Budget with worst-case double-buffered params (covers the fallback path),
    # double-buffered batch streams, and f32 activation temps; clamp to v7x's
    # 64 MiB physical VMEM so one setting works on every generation.
    stream_bytes = 2 * tile_b * (in_pad * io_itemsize + lat_pad * 4
                                 + in_pad * io_itemsize + 2 * lat_pad * 4)
    act_bytes = 4 * tile_b * (2 * hid_pad + 2 * lat_pad + in_pad) * 4
    vmem_limit = int(1.5 * (2 * param_bytes + stream_bytes + act_bytes)) + (4 << 20)
    vmem_limit = max(16 << 20, min(vmem_limit, 64 << 20))

    def _run(param_pipeline_mode):
        if param_pipeline_mode is None:
            param_specs = [pl.BlockSpec(a.shape, lambda i: (0, 0)) for a in param_args]
        else:
            # Constant index_map -> a single resident buffer is enough; halves
            # the parameter VMEM footprint vs. the default double buffering.
            param_specs = [pl.BlockSpec(a.shape, lambda i: (0, 0),
                                        pipeline_mode=param_pipeline_mode)
                           for a in param_args]
        call = pl.pallas_call(
            vae_kernel,
            out_shape=out_shape,
            grid_spec=pltpu.PrefetchScalarGridSpec(
                num_scalar_prefetch=0,
                grid=(grid_b,),
                in_specs=[batch_spec(in_pad), batch_spec(lat_pad)] + param_specs,
                out_specs=[batch_spec(in_pad), batch_spec(2 * lat_pad)],
            ),
            compiler_params=pltpu.CompilerParams(
                dimension_semantics=("parallel",),
                vmem_limit_bytes=vmem_limit,
            ),
            cost_estimate=cost,
        )
        outs = call(xp, epsp, *param_args)
        jax.block_until_ready(outs)
        return outs

    try:
        recon_p, ml_p = _run(pl.Buffered(1))
    except Exception:
        # Fallback if this JAX build rejects buffer_count=1 pipeline mode.
        recon_p, ml_p = _run(None)

    recon = recon_p[:B, :input_dim]
    mu = ml_p[:B, :latent_dim]
    logvar = ml_p[:B, lat_pad:lat_pad + latent_dim]
    return recon, mu, logvar


def init_params(key, input_dim, hidden_dim, latent_dim):
    """Deterministic synthetic parameters. Weights stored as [in, out]."""
    shapes = {
        "w1": (input_dim, hidden_dim), "b1": (1, hidden_dim),
        "w2": (hidden_dim, hidden_dim), "b2": (1, hidden_dim),
        "wmu": (hidden_dim, latent_dim), "bmu": (1, latent_dim),
        "wlv": (hidden_dim, latent_dim), "blv": (1, latent_dim),
        "wd1": (latent_dim, hidden_dim), "bd1": (1, hidden_dim),
        "wd2": (hidden_dim, hidden_dim), "bd2": (1, hidden_dim),
        "wd3": (hidden_dim, input_dim), "bd3": (1, input_dim),
    }
    params = {}
    keys = jax.random.split(key, len(shapes))
    for k, (name, shape) in zip(keys, sorted(shapes.items())):
        params[name] = (0.1 * jax.random.normal(k, shape)).astype(jnp.float32)
    return params


def vae_forward_ref(x, eps, p):
    """Pure-JAX f32 reference for correctness checking."""
    h = jax.nn.relu(x @ p["w1"] + p["b1"])
    h = jax.nn.relu(h @ p["w2"] + p["b2"])
    mu = h @ p["wmu"] + p["bmu"]
    logvar = h @ p["wlv"] + p["blv"]
    z = mu + eps * jnp.exp(0.5 * logvar)
    d = jax.nn.relu(z @ p["wd1"] + p["bd1"])
    d = jax.nn.relu(d @ p["wd2"] + p["bd2"])
    recon = jax.nn.sigmoid(d @ p["wd3"] + p["bd3"])
    return recon, mu, logvar


if __name__ == "__main__":
    B, INPUT_DIM, HIDDEN_DIM, LATENT_DIM = 16, 64, 32, 16

    key = jax.random.PRNGKey(0)
    k_x, k_eps, k_p = jax.random.split(key, 3)

    x = jax.random.uniform(k_x, (B, INPUT_DIM), dtype=jnp.float32)
    # eps ~ N(0, 1), matching torch.randn_like(std) in reparameterize()
    eps = jax.random.normal(k_eps, (B, LATENT_DIM), dtype=jnp.float32)
    params = init_params(k_p, INPUT_DIM, HIDDEN_DIM, LATENT_DIM)

    recon_r, mu_r, logvar_r = vae_forward_ref(x, eps, params)

    # f32 path (exact parity with the PyTorch module, up to accumulation order)
    prep_f32 = prepare_params(params, weight_dtype=jnp.float32)
    recon, mu, logvar = vae_forward(x, eps, prep_f32)
    jax.block_until_ready((recon, mu, logvar))
    assert jnp.allclose(recon, recon_r, atol=1e-5, rtol=1e-5)
    assert jnp.allclose(mu, mu_r, atol=1e-5, rtol=1e-5)
    assert jnp.allclose(logvar, logvar_r, atol=1e-5, rtol=1e-5)

    # Ragged batch (not a multiple of 8): exercises grid=cdiv + row padding.
    Br = 10
    recon2, mu2, logvar2 = vae_forward(x[:Br], eps[:Br], prep_f32)
    jax.block_until_ready((recon2, mu2, logvar2))
    assert recon2.shape == (Br, INPUT_DIM)
    assert jnp.allclose(recon2, recon_r[:Br], atol=1e-5, rtol=1e-5)
    assert jnp.allclose(mu2, mu_r[:Br], atol=1e-5, rtol=1e-5)
    assert jnp.allclose(logvar2, logvar_r[:Br], atol=1e-5, rtol=1e-5)

    # bf16 weights + bf16 x/recon I/O (f32 accumulate): production default on
    # v6e/v7x (2x MXU throughput, half the weight VMEM and per-row DMA).
    prep_bf16 = prepare_params(params, weight_dtype=jnp.bfloat16)
    recon_b, mu_b, logvar_b = vae_forward(x, eps, prep_bf16, io_dtype=jnp.bfloat16)
    jax.block_until_ready((recon_b, mu_b, logvar_b))
    assert jnp.allclose(recon_b.astype(jnp.float32), recon_r, atol=2e-2, rtol=2e-2)
    assert jnp.allclose(mu_b, mu_r, atol=2e-2, rtol=2e-2)
    assert jnp.allclose(logvar_b, logvar_r, atol=2e-2, rtol=2e-2)

    print("KERNEL_OK")
</pallas_src>

<mosaic_0001>
module attributes {stable_mosaic.version = 11 : i64} {
  func.func @vae_kernel(%arg0: i32, %arg1: memref<16x128xf32, #tpu.memory_space<vmem>>, %arg2: memref<16x128xf32, #tpu.memory_space<vmem>>, %arg3: memref<128x128xf32, #tpu.memory_space<vmem>>, %arg4: memref<1x128xf32, #tpu.memory_space<vmem>>, %arg5: memref<128x128xf32, #tpu.memory_space<vmem>>, %arg6: memref<1x128xf32, #tpu.memory_space<vmem>>, %arg7: memref<128x256xf32, #tpu.memory_space<vmem>>, %arg8: memref<1x256xf32, #tpu.memory_space<vmem>>, %arg9: memref<128x128xf32, #tpu.memory_space<vmem>>, %arg10: memref<1x128xf32, #tpu.memory_space<vmem>>, %arg11: memref<128x128xf32, #tpu.memory_space<vmem>>, %arg12: memref<1x128xf32, #tpu.memory_space<vmem>>, %arg13: memref<128x128xf32, #tpu.memory_space<vmem>>, %arg14: memref<1x128xf32, #tpu.memory_space<vmem>>, %arg15: memref<16x128xf32, #tpu.memory_space<vmem>>, %arg16: memref<16x256xf32, #tpu.memory_space<vmem>>) attributes {dimension_semantics = [#tpu.dimension_semantics<parallel>], iteration_bounds = array<i64: 1>, scalar_prefetch = 0 : i64, scratch_operands = 0 : i64, tpu.core_type = #tpu.core_type<tc>, window_params = [{transform_indices = @transform_0, window_bounds = array<i64: 16, 128>}, {transform_indices = @transform_1, window_bounds = array<i64: 16, 128>}, {pipeline_mode = #tpu.pipeline_mode<synchronous>, transform_indices = @transform_2, window_bounds = array<i64: 128, 128>}, {pipeline_mode = #tpu.pipeline_mode<synchronous>, transform_indices = @transform_3, window_bounds = array<i64: 1, 128>}, {pipeline_mode = #tpu.pipeline_mode<synchronous>, transform_indices = @transform_4, window_bounds = array<i64: 128, 128>}, {pipeline_mode = #tpu.pipeline_mode<synchronous>, transform_indices = @transform_5, window_bounds = array<i64: 1, 128>}, {pipeline_mode = #tpu.pipeline_mode<synchronous>, transform_indices = @transform_6, window_bounds = array<i64: 128, 256>}, {pipeline_mode = #tpu.pipeline_mode<synchronous>, transform_indices = @transform_7, window_bounds = array<i64: 1, 256>}, {pipeline_mode = #tpu.pipeline_mode<synchronous>, transform_indices = @transform_8, window_bounds = array<i64: 128, 128>}, {pipeline_mode = #tpu.pipeline_mode<synchronous>, transform_indices = @transform_9, window_bounds = array<i64: 1, 128>}, {pipeline_mode = #tpu.pipeline_mode<synchronous>, transform_indices = @transform_10, window_bounds = array<i64: 128, 128>}, {pipeline_mode = #tpu.pipeline_mode<synchronous>, transform_indices = @transform_11, window_bounds = array<i64: 1, 128>}, {pipeline_mode = #tpu.pipeline_mode<synchronous>, transform_indices = @transform_12, window_bounds = array<i64: 128, 128>}, {pipeline_mode = #tpu.pipeline_mode<synchronous>, transform_indices = @transform_13, window_bounds = array<i64: 1, 128>}, {transform_indices = @transform_14, window_bounds = array<i64: 16, 128>}, {transform_indices = @transform_15, window_bounds = array<i64: 16, 256>}]} {
    %c0 = arith.constant 0 : index
    %c0_0 = arith.constant 0 : index
    %0 = vector.load %arg1[%c0, %c0_0] : memref<16x128xf32, #tpu.memory_space<vmem>>, vector<16x128xf32>
    %c0_1 = arith.constant 0 : index
    %c0_2 = arith.constant 0 : index
    %1 = vector.load %arg3[%c0_1, %c0_2] : memref<128x128xf32, #tpu.memory_space<vmem>>, vector<128x128xf32>
    %cst = arith.constant dense<0.000000e+00> : vector<16x128xf32>
    %2 = tpu.matmul %0, %1, %cst {dimension_numbers = #tpu.dot_dimension_numbers<[1], [0], [0], [1], [0, 0, 1, 1], [], []>} : vector<16x128xf32>, vector<128x128xf32>, vector<16x128xf32> -> vector<16x128xf32>
    %c0_3 = arith.constant 0 : index
    %c0_4 = arith.constant 0 : index
    %3 = vector.load %arg4[%c0_3, %c0_4] : memref<1x128xf32, #tpu.memory_space<vmem>>, vector<1x128xf32>
    %4 = vector.broadcast %3 : vector<1x128xf32> to vector<16x128xf32>
    %5 = arith.addf %2, %4 : vector<16x128xf32>
    %cst_5 = arith.constant 0.000000e+00 : f32
    %6 = vector.broadcast %cst_5 : f32 to vector<16x128xf32>
    %7 = arith.maximumf %5, %6 : vector<16x128xf32>
    %c0_6 = arith.constant 0 : index
    %c0_7 = arith.constant 0 : index
    %8 = vector.load %arg5[%c0_6, %c0_7] : memref<128x128xf32, #tpu.memory_space<vmem>>, vector<128x128xf32>
    %cst_8 = arith.constant dense<0.000000e+00> : vector<16x128xf32>
    %9 = tpu.matmul %7, %8, %cst_8 {dimension_numbers = #tpu.dot_dimension_numbers<[1], [0], [0], [1], [0, 0, 1, 1], [], []>} : vector<16x128xf32>, vector<128x128xf32>, vector<16x128xf32> -> vector<16x128xf32>
    %c0_9 = arith.constant 0 : index
    %c0_10 = arith.constant 0 : index
    %10 = vector.load %arg6[%c0_9, %c0_10] : memref<1x128xf32, #tpu.memory_space<vmem>>, vector<1x128xf32>
    %11 = vector.broadcast %10 : vector<1x128xf32> to vector<16x128xf32>
    %12 = arith.addf %9, %11 : vector<16x128xf32>
    %cst_11 = arith.constant 0.000000e+00 : f32
    %13 = vector.broadcast %cst_11 : f32 to vector<16x128xf32>
    %14 = arith.maximumf %12, %13 : vector<16x128xf32>
    %c0_12 = arith.constant 0 : index
    %c0_13 = arith.constant 0 : index
    %15 = vector.load %arg7[%c0_12, %c0_13] : memref<128x256xf32, #tpu.memory_space<vmem>>, vector<128x256xf32>
    %cst_14 = arith.constant dense<0.000000e+00> : vector<16x256xf32>
    %16 = tpu.matmul %14, %15, %cst_14 {dimension_numbers = #tpu.dot_dimension_numbers<[1], [0], [0], [1], [0, 0, 1, 1], [], []>} : vector<16x128xf32>, vector<128x256xf32>, vector<16x256xf32> -> vector<16x256xf32>
    %c0_15 = arith.constant 0 : index
    %c0_16 = arith.constant 0 : index
    %17 = vector.load %arg8[%c0_15, %c0_16] : memref<1x256xf32, #tpu.memory_space<vmem>>, vector<1x256xf32>
    %18 = vector.broadcast %17 : vector<1x256xf32> to vector<16x256xf32>
    %19 = arith.addf %16, %18 : vector<16x256xf32>
    %20 = vector.extract_strided_slice %19 {offsets = [0, 0], sizes = [16, 128], strides = [1, 1]} : vector<16x256xf32> to vector<16x128xf32>
    %21 = vector.extract_strided_slice %19 {offsets = [0, 128], sizes = [16, 128], strides = [1, 1]} : vector<16x256xf32> to vector<16x128xf32>
    %c0_17 = arith.constant 0 : index
    %c0_18 = arith.constant 0 : index
    %22 = vector.load %arg2[%c0_17, %c0_18] : memref<16x128xf32, #tpu.memory_space<vmem>>, vector<16x128xf32>
    %cst_19 = arith.constant 5.000000e-01 : f32
    %23 = vector.broadcast %cst_19 : f32 to vector<16x128xf32>
    %24 = arith.mulf %23, %21 : vector<16x128xf32>
    %25 = math.exp %24 : vector<16x128xf32>
    %26 = arith.mulf %22, %25 : vector<16x128xf32>
    %27 = arith.addf %20, %26 : vector<16x128xf32>
    %c0_20 = arith.constant 0 : index
    %c0_21 = arith.constant 0 : index
    %28 = vector.load %arg9[%c0_20, %c0_21] : memref<128x128xf32, #tpu.memory_space<vmem>>, vector<128x128xf32>
    %cst_22 = arith.constant dense<0.000000e+00> : vector<16x128xf32>
    %29 = tpu.matmul %27, %28, %cst_22 {dimension_numbers = #tpu.dot_dimension_numbers<[1], [0], [0], [1], [0, 0, 1, 1], [], []>} : vector<16x128xf32>, vector<128x128xf32>, vector<16x128xf32> -> vector<16x128xf32>
    %c0_23 = arith.constant 0 : index
    %c0_24 = arith.constant 0 : index
    %30 = vector.load %arg10[%c0_23, %c0_24] : memref<1x128xf32, #tpu.memory_space<vmem>>, vector<1x128xf32>
    %31 = vector.broadcast %30 : vector<1x128xf32> to vector<16x128xf32>
    %32 = arith.addf %29, %31 : vector<16x128xf32>
    %cst_25 = arith.constant 0.000000e+00 : f32
    %33 = vector.broadcast %cst_25 : f32 to vector<16x128xf32>
    %34 = arith.maximumf %32, %33 : vector<16x128xf32>
    %c0_26 = arith.constant 0 : index
    %c0_27 = arith.constant 0 : index
    %35 = vector.load %arg11[%c0_26, %c0_27] : memref<128x128xf32, #tpu.memory_space<vmem>>, vector<128x128xf32>
    %cst_28 = arith.constant dense<0.000000e+00> : vector<16x128xf32>
    %36 = tpu.matmul %34, %35, %cst_28 {dimension_numbers = #tpu.dot_dimension_numbers<[1], [0], [0], [1], [0, 0, 1, 1], [], []>} : vector<16x128xf32>, vector<128x128xf32>, vector<16x128xf32> -> vector<16x128xf32>
    %c0_29 = arith.constant 0 : index
    %c0_30 = arith.constant 0 : index
    %37 = vector.load %arg12[%c0_29, %c0_30] : memref<1x128xf32, #tpu.memory_space<vmem>>, vector<1x128xf32>
    %38 = vector.broadcast %37 : vector<1x128xf32> to vector<16x128xf32>
    %39 = arith.addf %36, %38 : vector<16x128xf32>
    %cst_31 = arith.constant 0.000000e+00 : f32
    %40 = vector.broadcast %cst_31 : f32 to vector<16x128xf32>
    %41 = arith.maximumf %39, %40 : vector<16x128xf32>
    %c0_32 = arith.constant 0 : index
    %c0_33 = arith.constant 0 : index
    %42 = vector.load %arg13[%c0_32, %c0_33] : memref<128x128xf32, #tpu.memory_space<vmem>>, vector<128x128xf32>
    %cst_34 = arith.constant dense<0.000000e+00> : vector<16x128xf32>
    %43 = tpu.matmul %41, %42, %cst_34 {dimension_numbers = #tpu.dot_dimension_numbers<[1], [0], [0], [1], [0, 0, 1, 1], [], []>} : vector<16x128xf32>, vector<128x128xf32>, vector<16x128xf32> -> vector<16x128xf32>
    %c0_35 = arith.constant 0 : index
    %c0_36 = arith.constant 0 : index
    %44 = vector.load %arg14[%c0_35, %c0_36] : memref<1x128xf32, #tpu.memory_space<vmem>>, vector<1x128xf32>
    %45 = vector.broadcast %44 : vector<1x128xf32> to vector<16x128xf32>
    %46 = arith.addf %43, %45 : vector<16x128xf32>
    %47 = arith.negf %46 : vector<16x128xf32>
    %48 = math.exp %47 : vector<16x128xf32>
    %cst_37 = arith.constant 1.000000e+00 : f32
    %49 = vector.broadcast %cst_37 : f32 to vector<16x128xf32>
    %50 = arith.addf %49, %48 : vector<16x128xf32>
    %51 = arith.divf %49, %50 : vector<16x128xf32>
    %c0_38 = arith.constant 0 : index
    %c0_39 = arith.constant 0 : index
    %52 = vector.load %arg15[%c0_38, %c0_39] : memref<16x128xf32, #tpu.memory_space<vmem>>, vector<16x128xf32>
    tpu.vector_store %arg15[%c0_38, %c0_39], %51 {strides = array<i32>} : memref<16x128xf32, #tpu.memory_space<vmem>>, vector<16x128xf32>,
    %c0_40 = arith.constant 0 : index
    %c0_41 = arith.constant 0 : index
    %53 = vector.load %arg16[%c0_40, %c0_41] : memref<16x256xf32, #tpu.memory_space<vmem>>, vector<16x256xf32>
    tpu.vector_store %arg16[%c0_40, %c0_41], %19 {strides = array<i32>} : memref<16x256xf32, #tpu.memory_space<vmem>>, vector<16x256xf32>,
    return
  }
  func.func @transform_0(%arg0: i32) -> (i32, i32) {
    %c0_i32 = arith.constant 0 : i32
    %c0_i32_0 = arith.constant 0 : i32
    return %arg0, %c0_i32 : i32, i32
  }
  func.func @transform_1(%arg0: i32) -> (i32, i32) {
    %c0_i32 = arith.constant 0 : i32
    %c0_i32_0 = arith.constant 0 : i32
    return %arg0, %c0_i32 : i32, i32
  }
  func.func @transform_2(%arg0: i32) -> (i32, i32) {
    %c0_i32 = arith.constant 0 : i32
    %c0_i32_0 = arith.constant 0 : i32
    %c0_i32_1 = arith.constant 0 : i32
    return %c0_i32, %c0_i32_0 : i32, i32
  }
  func.func @transform_3(%arg0: i32) -> (i32, i32) {
    %c0_i32 = arith.constant 0 : i32
    %c0_i32_0 = arith.constant 0 : i32
    %c0_i32_1 = arith.constant 0 : i32
    return %c0_i32, %c0_i32_0 : i32, i32
  }
  func.func @transform_4(%arg0: i32) -> (i32, i32) {
    %c0_i32 = arith.constant 0 : i32
    %c0_i32_0 = arith.constant 0 : i32
    %c0_i32_1 = arith.constant 0 : i32
    return %c0_i32, %c0_i32_0 : i32, i32
  }
  func.func @transform_5(%arg0: i32) -> (i32, i32) {
    %c0_i32 = arith.constant 0 : i32
    %c0_i32_0 = arith.constant 0 : i32
    %c0_i32_1 = arith.constant 0 : i32
    return %c0_i32, %c0_i32_0 : i32, i32
  }
  func.func @transform_6(%arg0: i32) -> (i32, i32) {
    %c0_i32 = arith.constant 0 : i32
    %c0_i32_0 = arith.constant 0 : i32
    %c0_i32_1 = arith.constant 0 : i32
    return %c0_i32, %c0_i32_0 : i32, i32
  }
  func.func @transform_7(%arg0: i32) -> (i32, i32) {
    %c0_i32 = arith.constant 0 : i32
    %c0_i32_0 = arith.constant 0 : i32
    %c0_i32_1 = arith.constant 0 : i32
    return %c0_i32, %c0_i32_0 : i32, i32
  }
  func.func @transform_8(%arg0: i32) -> (i32, i32) {
    %c0_i32 = arith.constant 0 : i32
    %c0_i32_0 = arith.constant 0 : i32
    %c0_i32_1 = arith.constant 0 : i32
    return %c0_i32, %c0_i32_0 : i32, i32
  }
  func.func @transform_9(%arg0: i32) -> (i32, i32) {
    %c0_i32 = arith.constant 0 : i32
    %c0_i32_0 = arith.constant 0 : i32
    %c0_i32_1 = arith.constant 0 : i32
    return %c0_i32, %c0_i32_0 : i32, i32
  }
  func.func @transform_10(%arg0: i32) -> (i32, i32) {
    %c0_i32 = arith.constant 0 : i32
    %c0_i32_0 = arith.constant 0 : i32
    %c0_i32_1 = arith.constant 0 : i32
    return %c0_i32, %c0_i32_0 : i32, i32
  }
  func.func @transform_11(%arg0: i32) -> (i32, i32) {
    %c0_i32 = arith.constant 0 : i32
    %c0_i32_0 = arith.constant 0 : i32
    %c0_i32_1 = arith.constant 0 : i32
    return %c0_i32, %c0_i32_0 : i32, i32
  }
  func.func @transform_12(%arg0: i32) -> (i32, i32) {
    %c0_i32 = arith.constant 0 : i32
    %c0_i32_0 = arith.constant 0 : i32
    %c0_i32_1 = arith.constant 0 : i32
    return %c0_i32, %c0_i32_0 : i32, i32
  }
  func.func @transform_13(%arg0: i32) -> (i32, i32) {
    %c0_i32 = arith.constant 0 : i32
    %c0_i32_0 = arith.constant 0 : i32
    %c0_i32_1 = arith.constant 0 : i32
    return %c0_i32, %c0_i32_0 : i32, i32
  }
  func.func @transform_14(%arg0: i32) -> (i32, i32) {
    %c0_i32 = arith.constant 0 : i32
    %c0_i32_0 = arith.constant 0 : i32
    return %arg0, %c0_i32 : i32, i32
  }
  func.func @transform_15(%arg0: i32) -> (i32, i32) {
    %c0_i32 = arith.constant 0 : i32
    %c0_i32_0 = arith.constant 0 : i32
    return %arg0, %c0_i32 : i32, i32
  }
}

module attributes {stable_mosaic.version = 11 : i64} {
  func.func @vae_kernel(%arg0: i32, %arg1: memref<16x128xf32, #tpu.memory_space<vmem>>, %arg2: memref<16x128xf32, #tpu.memory_space<vmem>>, %arg3: memref<128x128xf32, #tpu.memory_space<vmem>>, %arg4: memref<1x128xf32, #tpu.memory_space<vmem>>, %arg5: memref<128x128xf32, #tpu.memory_space<vmem>>, %arg6: memref<1x128xf32, #tpu.memory_space<vmem>>, %arg7: memref<128x256xf32, #tpu.memory_space<vmem>>, %arg8: memref<1x256xf32, #tpu.memory_space<vmem>>, %arg9: memref<128x128xf32, #tpu.memory_space<vmem>>, %arg10: memref<1x128xf32, #tpu.memory_space<vmem>>, %arg11: memref<128x128xf32, #tpu.memory_space<vmem>>, %arg12: memref<1x128xf32, #tpu.memory_space<vmem>>, %arg13: memref<128x128xf32, #tpu.memory_space<vmem>>, %arg14: memref<1x128xf32, #tpu.memory_space<vmem>>, %arg15: memref<16x128xf32, #tpu.memory_space<vmem>>, %arg16: memref<16x256xf32, #tpu.memory_space<vmem>>) attributes {dimension_semantics = [#tpu.dimension_semantics<parallel>], iteration_bounds = array<i64: 1>, scalar_prefetch = 0 : i64, scratch_operands = 0 : i64, tpu.core_type = #tpu.core_type<tc>, window_params = [{transform_indices = @transform_0, window_bounds = array<i64: 16, 128>}, {transform_indices = @transform_1, window_bounds = array<i64: 16, 128>}, {pipeline_mode = #tpu.pipeline_mode<synchronous>, transform_indices = @transform_2, window_bounds = array<i64: 128, 128>}, {pipeline_mode = #tpu.pipeline_mode<synchronous>, transform_indices = @transform_3, window_bounds = array<i64: 1, 128>}, {pipeline_mode = #tpu.pipeline_mode<synchronous>, transform_indices = @transform_4, window_bounds = array<i64: 128, 128>}, {pipeline_mode = #tpu.pipeline_mode<synchronous>, transform_indices = @transform_5, window_bounds = array<i64: 1, 128>}, {pipeline_mode = #tpu.pipeline_mode<synchronous>, transform_indices = @transform_6, window_bounds = array<i64: 128, 256>}, {pipeline_mode = #tpu.pipeline_mode<synchronous>, transform_indices = @transform_7, window_bounds = array<i64: 1, 256>}, {pipeline_mode = #tpu.pipeline_mode<synchronous>, transform_indices = @transform_8, window_bounds = array<i64: 128, 128>}, {pipeline_mode = #tpu.pipeline_mode<synchronous>, transform_indices = @transform_9, window_bounds = array<i64: 1, 128>}, {pipeline_mode = #tpu.pipeline_mode<synchronous>, transform_indices = @transform_10, window_bounds = array<i64: 128, 128>}, {pipeline_mode = #tpu.pipeline_mode<synchronous>, transform_indices = @transform_11, window_bounds = array<i64: 1, 128>}, {pipeline_mode = #tpu.pipeline_mode<synchronous>, transform_indices = @transform_12, window_bounds = array<i64: 128, 128>}, {pipeline_mode = #tpu.pipeline_mode<synchronous>, transform_indices = @transform_13, window_bounds = array<i64: 1, 128>}, {transform_indices = @transform_14, window_bounds = array<i64: 16, 128>}, {transform_indices = @transform_15, window_bounds = array<i64: 16, 256>}]} {
    %c0 = arith.constant 0 : index
    %c0_0 = arith.constant 0 : index
    %0 = vector.load %arg1[%c0, %c0_0] : memref<16x128xf32, #tpu.memory_space<vmem>>, vector<16x128xf32>
    %c0_1 = arith.constant 0 : index
    %c0_2 = arith.constant 0 : index
    %1 = vector.load %arg3[%c0_1, %c0_2] : memref<128x128xf32, #tpu.memory_space<vmem>>, vector<128x128xf32>
    %cst = arith.constant dense<0.000000e+00> : vector<16x128xf32>
    %2 = tpu.matmul %0, %1, %cst {dimension_numbers = #tpu.dot_dimension_numbers<[1], [0], [0], [1], [0, 0, 1, 1], [], []>} : vector<16x128xf32>, vector<128x128xf32>, vector<16x128xf32> -> vector<16x128xf32>
    %c0_3 = arith.constant 0 : index
    %c0_4 = arith.constant 0 : index
    %3 = vector.load %arg4[%c0_3, %c0_4] : memref<1x128xf32, #tpu.memory_space<vmem>>, vector<1x128xf32>
    %4 = vector.broadcast %3 : vector<1x128xf32> to vector<16x128xf32>
    %5 = arith.addf %2, %4 : vector<16x128xf32>
    %cst_5 = arith.constant 0.000000e+00 : f32
    %6 = vector.broadcast %cst_5 : f32 to vector<16x128xf32>
    %7 = arith.maximumf %5, %6 : vector<16x128xf32>
    %c0_6 = arith.constant 0 : index
    %c0_7 = arith.constant 0 : index
    %8 = vector.load %arg5[%c0_6, %c0_7] : memref<128x128xf32, #tpu.memory_space<vmem>>, vector<128x128xf32>
    %cst_8 = arith.constant dense<0.000000e+00> : vector<16x128xf32>
    %9 = tpu.matmul %7, %8, %cst_8 {dimension_numbers = #tpu.dot_dimension_numbers<[1], [0], [0], [1], [0, 0, 1, 1], [], []>} : vector<16x128xf32>, vector<128x128xf32>, vector<16x128xf32> -> vector<16x128xf32>
    %c0_9 = arith.constant 0 : index
    %c0_10 = arith.constant 0 : index
    %10 = vector.load %arg6[%c0_9, %c0_10] : memref<1x128xf32, #tpu.memory_space<vmem>>, vector<1x128xf32>
    %11 = vector.broadcast %10 : vector<1x128xf32> to vector<16x128xf32>
    %12 = arith.addf %9, %11 : vector<16x128xf32>
    %cst_11 = arith.constant 0.000000e+00 : f32
    %13 = vector.broadcast %cst_11 : f32 to vector<16x128xf32>
    %14 = arith.maximumf %12, %13 : vector<16x128xf32>
    %c0_12 = arith.constant 0 : index
    %c0_13 = arith.constant 0 : index
    %15 = vector.load %arg7[%c0_12, %c0_13] : memref<128x256xf32, #tpu.memory_space<vmem>>, vector<128x256xf32>
    %cst_14 = arith.constant dense<0.000000e+00> : vector<16x256xf32>
    %16 = tpu.matmul %14, %15, %cst_14 {dimension_numbers = #tpu.dot_dimension_numbers<[1], [0], [0], [1], [0, 0, 1, 1], [], []>} : vector<16x128xf32>, vector<128x256xf32>, vector<16x256xf32> -> vector<16x256xf32>
    %c0_15 = arith.constant 0 : index
    %c0_16 = arith.constant 0 : index
    %17 = vector.load %arg8[%c0_15, %c0_16] : memref<1x256xf32, #tpu.memory_space<vmem>>, vector<1x256xf32>
    %18 = vector.broadcast %17 : vector<1x256xf32> to vector<16x256xf32>
    %19 = arith.addf %16, %18 : vector<16x256xf32>
    %20 = vector.extract_strided_slice %19 {offsets = [0, 0], sizes = [16, 128], strides = [1, 1]} : vector<16x256xf32> to vector<16x128xf32>
    %21 = vector.extract_strided_slice %19 {offsets = [0, 128], sizes = [16, 128], strides = [1, 1]} : vector<16x256xf32> to vector<16x128xf32>
    %c0_17 = arith.constant 0 : index
    %c0_18 = arith.constant 0 : index
    %22 = vector.load %arg2[%c0_17, %c0_18] : memref<16x128xf32, #tpu.memory_space<vmem>>, vector<16x128xf32>
    %cst_19 = arith.constant 5.000000e-01 : f32
    %23 = vector.broadcast %cst_19 : f32 to vector<16x128xf32>
    %24 = arith.mulf %23, %21 : vector<16x128xf32>
    %25 = math.exp %24 : vector<16x128xf32>
    %26 = arith.mulf %22, %25 : vector<16x128xf32>
    %27 = arith.addf %20, %26 : vector<16x128xf32>
    %c0_20 = arith.constant 0 : index
    %c0_21 = arith.constant 0 : index
    %28 = vector.load %arg9[%c0_20, %c0_21] : memref<128x128xf32, #tpu.memory_space<vmem>>, vector<128x128xf32>
    %cst_22 = arith.constant dense<0.000000e+00> : vector<16x128xf32>
    %29 = tpu.matmul %27, %28, %cst_22 {dimension_numbers = #tpu.dot_dimension_numbers<[1], [0], [0], [1], [0, 0, 1, 1], [], []>} : vector<16x128xf32>, vector<128x128xf32>, vector<16x128xf32> -> vector<16x128xf32>
    %c0_23 = arith.constant 0 : index
    %c0_24 = arith.constant 0 : index
    %30 = vector.load %arg10[%c0_23, %c0_24] : memref<1x128xf32, #tpu.memory_space<vmem>>, vector<1x128xf32>
    %31 = vector.broadcast %30 : vector<1x128xf32> to vector<16x128xf32>
    %32 = arith.addf %29, %31 : vector<16x128xf32>
    %cst_25 = arith.constant 0.000000e+00 : f32
    %33 = vector.broadcast %cst_25 : f32 to vector<16x128xf32>
    %34 = arith.maximumf %32, %33 : vector<16x128xf32>
    %c0_26 = arith.constant 0 : index
    %c0_27 = arith.constant 0 : index
    %35 = vector.load %arg11[%c0_26, %c0_27] : memref<128x128xf32, #tpu.memory_space<vmem>>, vector<128x128xf32>
    %cst_28 = arith.constant dense<0.000000e+00> : vector<16x128xf32>
    %36 = tpu.matmul %34, %35, %cst_28 {dimension_numbers = #tpu.dot_dimension_numbers<[1], [0], [0], [1], [0, 0, 1, 1], [], []>} : vector<16x128xf32>, vector<128x128xf32>, vector<16x128xf32> -> vector<16x128xf32>
    %c0_29 = arith.constant 0 : index
    %c0_30 = arith.constant 0 : index
    %37 = vector.load %arg12[%c0_29, %c0_30] : memref<1x128xf32, #tpu.memory_space<vmem>>, vector<1x128xf32>
    %38 = vector.broadcast %37 : vector<1x128xf32> to vector<16x128xf32>
    %39 = arith.addf %36, %38 : vector<16x128xf32>
    %cst_31 = arith.constant 0.000000e+00 : f32
    %40 = vector.broadcast %cst_31 : f32 to vector<16x128xf32>
    %41 = arith.maximumf %39, %40 : vector<16x128xf32>
    %c0_32 = arith.constant 0 : index
    %c0_33 = arith.constant 0 : index
    %42 = vector.load %arg13[%c0_32, %c0_33] : memref<128x128xf32, #tpu.memory_space<vmem>>, vector<128x128xf32>
    %cst_34 = arith.constant dense<0.000000e+00> : vector<16x128xf32>
    %43 = tpu.matmul %41, %42, %cst_34 {dimension_numbers = #tpu.dot_dimension_numbers<[1], [0], [0], [1], [0, 0, 1, 1], [], []>} : vector<16x128xf32>, vector<128x128xf32>, vector<16x128xf32> -> vector<16x128xf32>
    %c0_35 = arith.constant 0 : index
    %c0_36 = arith.constant 0 : index
    %44 = vector.load %arg14[%c0_35, %c0_36] : memref<1x128xf32, #tpu.memory_space<vmem>>, vector<1x128xf32>
    %45 = vector.broadcast %44 : vector<1x128xf32> to vector<16x128xf32>
    %46 = arith.addf %43, %45 : vector<16x128xf32>
    %47 = arith.negf %46 : vector<16x128xf32>
    %48 = math.exp %47 : vector<16x128xf32>
    %cst_37 = arith.constant 1.000000e+00 : f32
    %49 = vector.broadcast %cst_37 : f32 to vector<16x128xf32>
    %50 = arith.addf %49, %48 : vector<16x128xf32>
    %51 = arith.divf %49, %50 : vector<16x128xf32>
    %c0_38 = arith.constant 0 : index
    %c0_39 = arith.constant 0 : index
    %52 = vector.load %arg15[%c0_38, %c0_39] : memref<16x128xf32, #tpu.memory_space<vmem>>, vector<16x128xf32>
    tpu.vector_store %arg15[%c0_38, %c0_39], %51 {strides = array<i32>} : memref<16x128xf32, #tpu.memory_space<vmem>>, vector<16x128xf32>,
    %c0_40 = arith.constant 0 : index
    %c0_41 = arith.constant 0 : index
    %53 = vector.load %arg16[%c0_40, %c0_41] : memref<16x256xf32, #tpu.memory_space<vmem>>, vector<16x256xf32>
    tpu.vector_store %arg16[%c0_40, %c0_41], %19 {strides = array<i32>} : memref<16x256xf32, #tpu.memory_space<vmem>>, vector<16x256xf32>,
    return
  }
  func.func @transform_0(%arg0: i32) -> (i32, i32) {
    %c0_i32 = arith.constant 0 : i32
    %c0_i32_0 = arith.constant 0 : i32
    return %arg0, %c0_i32 : i32, i32
  }
  func.func @transform_1(%arg0: i32) -> (i32, i32) {
    %c0_i32 = arith.constant 0 : i32
    %c0_i32_0 = arith.constant 0 : i32
    return %arg0, %c0_i32 : i32, i32
  }
  func.func @transform_2(%arg0: i32) -> (i32, i32) {
    %c0_i32 = arith.constant 0 : i32
    %c0_i32_0 = arith.constant 0 : i32
    %c0_i32_1 = arith.constant 0 : i32
    return %c0_i32, %c0_i32_0 : i32, i32
  }
  func.func @transform_3(%arg0: i32) -> (i32, i32) {
    %c0_i32 = arith.constant 0 : i32
    %c0_i32_0 = arith.constant 0 : i32
    %c0_i32_1 = arith.constant 0 : i32
    return %c0_i32, %c0_i32_0 : i32, i32
  }
  func.func @transform_4(%arg0: i32) -> (i32, i32) {
    %c0_i32 = arith.constant 0 : i32
    %c0_i32_0 = arith.constant 0 : i32
    %c0_i32_1 = arith.constant 0 : i32
    return %c0_i32, %c0_i32_0 : i32, i32
  }
  func.func @transform_5(%arg0: i32) -> (i32, i32) {
    %c0_i32 = arith.constant 0 : i32
    %c0_i32_0 = arith.constant 0 : i32
    %c0_i32_1 = arith.constant 0 : i32
    return %c0_i32, %c0_i32_0 : i32, i32
  }
  func.func @transform_6(%arg0: i32) -> (i32, i32) {
    %c0_i32 = arith.constant 0 : i32
    %c0_i32_0 = arith.constant 0 : i32
    %c0_i32_1 = arith.constant 0 : i32
    return %c0_i32, %c0_i32_0 : i32, i32
  }
  func.func @transform_7(%arg0: i32) -> (i32, i32) {
    %c0_i32 = arith.constant 0 : i32
    %c0_i32_0 = arith.constant 0 : i32
    %c0_i32_1 = arith.constant 0 : i32
    return %c0_i32, %c0_i32_0 : i32, i32
  }
  func.func @transform_8(%arg0: i32) -> (i32, i32) {
    %c0_i32 = arith.constant 0 : i32
    %c0_i32_0 = arith.constant 0 : i32
    %c0_i32_1 = arith.constant 0 : i32
    return %c0_i32, %c0_i32_0 : i32, i32
  }
  func.func @transform_9(%arg0: i32) -> (i32, i32) {
    %c0_i32 = arith.constant 0 : i32
    %c0_i32_0 = arith.constant 0 : i32
    %c0_i32_1 = arith.constant 0 : i32
    return %c0_i32, %c0_i32_0 : i32, i32
  }
  func.func @transform_10(%arg0: i32) -> (i32, i32) {
    %c0_i32 = arith.constant 0 : i32
    %c0_i32_0 = arith.constant 0 : i32
    %c0_i32_1 = arith.constant 0 : i32
    return %c0_i32, %c0_i32_0 : i32, i32
  }
  func.func @transform_11(%arg0: i32) -> (i32, i32) {
    %c0_i32 = arith.constant 0 : i32
    %c0_i32_0 = arith.constant 0 : i32
    %c0_i32_1 = arith.constant 0 : i32
    return %c0_i32, %c0_i32_0 : i32, i32
  }
  func.func @transform_12(%arg0: i32) -> (i32, i32) {
    %c0_i32 = arith.constant 0 : i32
    %c0_i32_0 = arith.constant 0 : i32
    %c0_i32_1 = arith.constant 0 : i32
    return %c0_i32, %c0_i32_0 : i32, i32
  }
  func.func @transform_13(%arg0: i32) -> (i32, i32) {
    %c0_i32 = arith.constant 0 : i32
    %c0_i32_0 = arith.constant 0 : i32
    %c0_i32_1 = arith.constant 0 : i32
    return %c0_i32, %c0_i32_0 : i32, i32
  }
  func.func @transform_14(%arg0: i32) -> (i32, i32) {
    %c0_i32 = arith.constant 0 : i32
    %c0_i32_0 = arith.constant 0 : i32
    return %arg0, %c0_i32 : i32, i32
  }
  func.func @transform_15(%arg0: i32) -> (i32, i32) {
    %c0_i32 = arith.constant 0 : i32
    %c0_i32_0 = arith.constant 0 : i32
    return %arg0, %c0_i32 : i32, i32
  }
}

</mosaic_0001>

<bundles_post_ra>
// kernel: tpu_custom_call.1
= control target key start
LH: loop header
LB: loop body
LE: loop exit
PB: predicated region body
PF: predicated region fallthrough
CT: control target
= control target key end

     0   :  { %21 = vsyncpa [#allocation3], 0  ;;  %s1057_s0 = inlined_call_operand.hbm [shape: f32[16,128], index: 0, kind: input, shape index: {}]   ;;  %s1058_s1 = inlined_call_operand.hbm [shape: f32[16,128], index: 1, kind: input, shape index: {}]   ;;  %s1059_s2 = inlined_call_operand.hbm [shape: f32[128,128], index: 2, kind: input, shape index: {}]   ;;  %s1060_s3 = inlined_call_operand.vmem [shape: f32[1,128], index: 3, kind: input, shape index: {}]   ;;  %s1061_s4 = inlined_call_operand.hbm [shape: f32[128,128], index: 4, kind: input, shape index: {}]   ;;  %s1062_s5 = inlined_call_operand.vmem [shape: f32[1,128], index: 5, kind: input, shape index: {}]   ;;  %s1063_s6 = inlined_call_operand.hbm [shape: f32[128,256], index: 6, kind: input, shape index: {}]   ;;  %s1064_s7 = inlined_call_operand.vmem [shape: f32[1,256], index: 7, kind: input, shape index: {}]   ;;  %s1065_s8 = inlined_call_operand.hbm [shape: f32[128,128], index: 8, kind: input, shape index: {}]   ;;  %s1066_s9 = inlined_call_operand.vmem [shape: f32[1,128], index: 9, kind: input, shape index: {}]   ;;  %s1067_s10 = inlined_call_operand.hbm [shape: f32[128,128], index: 10, kind: input, shape index: {}]   ;;  %s1068_s11 = inlined_call_operand.vmem [shape: f32[1,128], index: 11, kind: input, shape index: {}]   ;;  %s1069_s12 = inlined_call_operand.hbm [shape: f32[128,128], index: 12, kind: input, shape index: {}]   ;;  %s1070_s13 = inlined_call_operand.vmem [shape: f32[1,128], index: 13, kind: input, shape index: {}]   ;;  %s1071_s14 = inlined_call_operand.hbm [shape: f32[16,128], index: 14, kind: output, shape index: {0}]   ;;  %s1072_s15 = inlined_call_operand.hbm [shape: f32[16,256], index: 15, kind: output, shape index: {1}]  }
   0x1   :  { %22 = vsyncpa [#allocation6], 0 }
   0x2   :  { %23 = vsyncpa [#allocation9], 0 }
   0x3   :  { %24 = vsyncpa [#allocation12], 0 }
   0x4   :  { %25 = vsyncpa [#allocation15], 0 }
   0x5   :  { %26 = vsyncpa [#allocation4], 0 }
   0x6   :  { %27 = vsyncpa [#allocation18], 0  ;;  %s45_s20 = sshll.u32 %s1058_s1, 4  ;;  %s885_s21 = smov [#allocation5]   ;;  %s46_s20 = int_to_ptr.hbm [resolvable:$true] %s45_s20 }
   0x7   :  { %s47_s22 = sshll.u32 %s885_s21, 4  ;;  %s73_s25 = sshll.u32 %s1061_s4, 4  ;;  %s48_s22 = int_to_ptr.vmem [resolvable:$true] %s47_s22  ;;  %s74_s25 = int_to_ptr.hbm [resolvable:$true] %s73_s25 }
   0x8   :  { %s886_s26 = smov 128   ;;  %s887_s27 = smov 8  }
   0x9   :  { %53 = dma.hbm_to_vmem [thread:$0]  %s46_s20, 256, %s48_s22, [#allocation6], %s886_s26, %s886_s26, %s887_s27  }
   0xa   :  { %s888_s28 = smov [#allocation8]   ;;  %s103_s1 = sshll.u32 %s1065_s8, 4  ;;  %s104_s1 = int_to_ptr.hbm [resolvable:$true] %s103_s1 }
   0xb   :  { %s75_s29 = sshll.u32 %s888_s28, 4  ;;  %s32_s18 = sshll.u32 %s1057_s0, 4  ;;  %s76_s29 = int_to_ptr.vmem [resolvable:$true] %s75_s29  ;;  %s33_s18 = int_to_ptr.hbm [resolvable:$true] %s32_s18 }
   0xc   :  { %81 = dma.hbm_to_vmem [thread:$0]  %s74_s25, 2048, %s76_s29, [#allocation9], %s886_s26, %s886_s26, %s887_s27  }
   0xd   :  { %s889_s19 = smov [#allocation11]   ;;  %s890_s20 = smov [#allocation2]  }
   0xe   :  { %s105_s21 = sshll.u32 %s889_s19, 4  ;;  %s34_s8 = sshll.u32 %s890_s20, 4  ;;  %s106_s21 = int_to_ptr.vmem [resolvable:$true] %s105_s21  ;;  %s35_s8 = int_to_ptr.vmem [resolvable:$true] %s34_s8 }
   0xf   :  { %111 = dma.hbm_to_vmem [thread:$0]  %s104_s1, 2048, %s106_s21, [#allocation12], %s886_s26, %s886_s26, %s887_s27  }
  0x10   :  { %s58_s24 = sshll.u32 %s1059_s2, 4  ;;  %s88_s28 = sshll.u32 %s1063_s6, 4  ;;  %s59_s24 = int_to_ptr.hbm [resolvable:$true] %s58_s24  ;;  %s89_s28 = int_to_ptr.hbm [resolvable:$true] %s88_s28 }
  0x11   :  { %40 = dma.hbm_to_vmem [thread:$0]  %s33_s18, 256, %s35_s8, [#allocation3], %s886_s26, %s886_s26, %s887_s27  }
  0x12   :  { %s891_s29 = smov [#allocation7]   ;;  %s892_s16 = smov [#allocation10]  }
  0x13   :  { %s60_s30 = sshll.u32 %s891_s29, 4  ;;  %s90_s2 = sshll.u32 %s892_s16, 4  ;;  %s61_s30 = int_to_ptr.vmem [resolvable:$true] %s60_s30  ;;  %s91_s2 = int_to_ptr.vmem [resolvable:$true] %s90_s2 }
  0x14   :  { %66 = dma.hbm_to_vmem [thread:$0]  %s59_s24, 2048, %s61_s30, [#allocation6], %s886_s26, %s886_s26, %s887_s27  }
  0x15   :  { %s893_s1 = smov 256   ;;  %s894_s4 = smov 16  }
  0x16   :  { %96 = dma.hbm_to_vmem [thread:$0]  %s89_s28, 4096, %s91_s2, [#allocation9], %s893_s1, %s893_s1, %s894_s4  }
  0x17   :  { %s118_s6 = sshll.u32 %s1067_s10, 4  ;;  %s895_s19 = smov [#allocation13]   ;;  %s119_s6 = int_to_ptr.hbm [resolvable:$true] %s118_s6 }
  0x18   :  { %s120_s21 = sshll.u32 %s895_s19, 4  ;;  %s133_s22 = sshll.u32 %s1069_s12, 4  ;;  %s121_s21 = int_to_ptr.vmem [resolvable:$true] %s120_s21  ;;  %s134_s22 = int_to_ptr.hbm [resolvable:$true] %s133_s22 }
  0x19   :  { %126 = dma.hbm_to_vmem [thread:$0]  %s119_s6, 2048, %s121_s21, [#allocation12], %s886_s26, %s886_s26, %s887_s27  }
  0x1a   :  { %s896_s23 = smov [#allocation14]  }
  0x1b   :  { %s135_s24 = sshll.u32 %s896_s23, 4  ;;  %s136_s24 = int_to_ptr.vmem [resolvable:$true] %s135_s24 }
  0x1c   :  { %141 = dma.hbm_to_vmem [thread:$0]  %s134_s22, 2048, %s136_s24, [#allocation15], %s886_s26, %s886_s26, %s887_s27  }
  0x1d   :  { %871 = dma.done.wait [#allocation3], 256  }
  0x1e   :  { %872 = vsyncadd [#allocation3], 4294967040 }
  0x1f   :  { %873 = dma.done.wait [#allocation6], 2304  }
  0x20   :  { %874 = vsyncadd [#allocation6], 4294964992 }
  0x21   :  { %875 = dma.done.wait [#allocation9], 6144  }
  0x22   :  { %876 = vsyncadd [#allocation9], 4294961152 }
  0x23   :  { %877 = dma.done.wait [#allocation12], 4096  }
  0x24   :  { %878 = vsyncadd [#allocation12], 4294963200 }
  0x25   :  { %879 = dma.done.wait [#allocation15], 2048  }
  0x26   :  { %880 = vsyncadd [#allocation15], 4294965248  ;;  %v193_v0 = vld [vmem:[#allocation7 + $0x78] sm:$0xff]  ;;  %v192_v1 = vld [vmem:[#allocation7 + $0x70] sm:$0xff]  ;;  %s897_s30 = smov [#allocation17]   ;;  %s560_s18 = sshll.u32 %s1072_s15, 4  ;;  %s561_s18 = int_to_ptr.hbm [resolvable:$true] %s560_s18 }
  0x27   :  { %198 = vmatpush.msra.mxu0 %v193_v0  ;;  %v191_v2 = vld [vmem:[#allocation7 + $0x68] sm:$0xff]  ;;  %v190_v3 = vld [vmem:[#allocation7 + $0x60] sm:$0xff]  ;;  %v189_v4 = vld [vmem:[#allocation7 + $0x58] sm:$0xff]  ;;  %s558_s16 = sshll.u32 %s897_s30, 4  ;;  %s547_s19 = sshll.u32 %s1071_s14, 4  ;;  %s559_s16 = int_to_ptr.vmem [resolvable:$true] %s558_s16  ;;  %s548_s19 = int_to_ptr.hbm [resolvable:$true] %s547_s19 }
  0x28   :  { %v188_v5 = vld [vmem:[#allocation7 + $0x50] sm:$0xff]  ;;  %v238_v6 = vld [vmem:[#allocation8 + $0x78] sm:$0xff]  ;;  %v187_v8 = vld [vmem:[#allocation7 + $0x48] sm:$0xff] }
  0x29   :  { %199 = vmatpush.msra.mxu0 %v192_v1  ;;  %v237_v7 = vld [vmem:[#allocation8 + $0x70] sm:$0xff]  ;;  %243 = vmatpush.msra.mxu1 %v238_v6  ;;  %v236_v9 = vld [vmem:[#allocation8 + $0x68] sm:$0xff]  ;;  %v186_v10 = vld [vmem:[#allocation7 + $0x40] sm:$0xff] }
  0x2a   :  { %v235_v11 = vld [vmem:[#allocation8 + $0x60] sm:$0xff]  ;;  %v185_v12 = vld [vmem:[#allocation7 + $0x38] sm:$0xff]  ;;  %v184_v14 = vld [vmem:[#allocation7 + $0x30] sm:$0xff] }
  0x2b   :  { %200 = vmatpush.msra.mxu0 %v191_v2  ;;  %244 = vmatpush.msra.mxu1 %v237_v7  ;;  %v234_v13 = vld [vmem:[#allocation8 + $0x58] sm:$0xff]  ;;  %v233_v15 = vld [vmem:[#allocation8 + $0x50] sm:$0xff]  ;;  %v183_v16 = vld [vmem:[#allocation7 + $0x28] sm:$0xff] }
  0x2c   :  { %v232_v17 = vld [vmem:[#allocation8 + $0x48] sm:$0xff]  ;;  %v182_v18 = vld [vmem:[#allocation7 + $0x20] sm:$0xff]  ;;  %v181_v20 = vld [vmem:[#allocation7 + $0x18] sm:$0xff] }
  0x2d   :  { %201 = vmatpush.msra.mxu0 %v190_v3  ;;  %245 = vmatpush.msra.mxu1 %v236_v9  ;;  %v231_v19 = vld [vmem:[#allocation8 + $0x40] sm:$0xff]  ;;  %v230_v21 = vld [vmem:[#allocation8 + $0x38] sm:$0xff]  ;;  %v180_v22 = vld [vmem:[#allocation7 + $0x10] sm:$0xff] }
  0x2e   :  { %v229_v23 = vld [vmem:[#allocation8 + $0x30] sm:$0xff]  ;;  %v179_v24 = vld [vmem:[#allocation7 + $0x8] sm:$0xff]  ;;  %v178_v26 = vld [vmem:[#allocation7] sm:$0xff] }
  0x2f   :  { %202 = vmatpush.msra.mxu0 %v189_v4  ;;  %246 = vmatpush.msra.mxu1 %v235_v11  ;;  %v228_v25 = vld [vmem:[#allocation8 + $0x28] sm:$0xff]  ;;  %v227_v27 = vld [vmem:[#allocation8 + $0x20] sm:$0xff]  ;;  %v226_v29 = vld [vmem:[#allocation8 + $0x18] sm:$0xff] }
  0x30   :  { %v176_v28 = vld [vmem:[#allocation2] sm:$0xff]  ;;  %v177_v30 = vld [vmem:[#allocation2 + $0x8] sm:$0xff]  ;;  %v225_v31 = vld [vmem:[#allocation8 + $0x10] sm:$0xff] }
  0x31   :  { %203 = vmatpush.msra.mxu0 %v188_v5  ;;  %247 = vmatpush.msra.mxu1 %v234_v13  ;;  %v224_v32 = vld [vmem:[#allocation8 + $0x8] sm:$0xff]  ;;  %v223_v33 = vld [vmem:[#allocation8] sm:$0xff]  ;;  %v298_v34 = vld [vmem:[#allocation10 + $0xf0] sm:$0xff] }
  0x32   :  { %v299_v35 = vld [vmem:[#allocation10 + $0xf8] sm:$0xff]  ;;  %v296_v36 = vld [vmem:[#allocation10 + $0xe0] sm:$0xff]  ;;  %306 = vmatpush.msra.mxu2 %v298_v34  ;;  %v297_v37 = vld [vmem:[#allocation10 + $0xe8] sm:$0xff] }
  0x33   :  { %204 = vmatpush.msra.mxu0 %v187_v8  ;;  %248 = vmatpush.msra.mxu1 %v233_v15  ;;  %v294_v38 = vld [vmem:[#allocation10 + $0xd0] sm:$0xff]  ;;  %v295_v39 = vld [vmem:[#allocation10 + $0xd8] sm:$0xff]  ;;  %v292_v40 = vld [vmem:[#allocation10 + $0xc0] sm:$0xff] }
  0x34   :  { %329 = vmatpush.msra.mxu3 %v299_v35  ;;  %307 = vmatpush.msra.mxu2 %v296_v36  ;;  %v293_v41 = vld [vmem:[#allocation10 + $0xc8] sm:$0xff]  ;;  %v290_v42 = vld [vmem:[#allocation10 + $0xb0] sm:$0xff]  ;;  %v291_v43 = vld [vmem:[#allocation10 + $0xb8] sm:$0xff] }
  0x35   :  { %205 = vmatpush.msra.mxu0 %v186_v10  ;;  %249 = vmatpush.msra.mxu1 %v232_v17  ;;  %v288_v44 = vld [vmem:[#allocation10 + $0xa0] sm:$0xff]  ;;  %v289_v45 = vld [vmem:[#allocation10 + $0xa8] sm:$0xff]  ;;  %v286_v46 = vld [vmem:[#allocation10 + $0x90] sm:$0xff] }
  0x36   :  { %330 = vmatpush.msra.mxu3 %v297_v37  ;;  %308 = vmatpush.msra.mxu2 %v294_v38  ;;  %v287_v47 = vld [vmem:[#allocation10 + $0x98] sm:$0xff]  ;;  %v284_v48 = vld [vmem:[#allocation10 + $0x80] sm:$0xff]  ;;  %v285_v49 = vld [vmem:[#allocation10 + $0x88] sm:$0xff] }
  0x37   :  { %206 = vmatpush.msra.mxu0 %v185_v12  ;;  %250 = vmatpush.msra.mxu1 %v231_v19  ;;  %v282_v50 = vld [vmem:[#allocation10 + $0x70] sm:$0xff]  ;;  %v283_v51 = vld [vmem:[#allocation10 + $0x78] sm:$0xff]  ;;  %v614_v52 = vld [vmem:[%s1060_s3] ss:$0 sm:$0xff] }
  0x38   :  { %331 = vmatpush.msra.mxu3 %v295_v39  ;;  %309 = vmatpush.msra.mxu2 %v292_v40  ;;  %v280_v53 = vld [vmem:[#allocation10 + $0x60] sm:$0xff]  ;;  %v281_v54 = vld [vmem:[#allocation10 + $0x68] sm:$0xff]  ;;  %v278_v55 = vld [vmem:[#allocation10 + $0x50] sm:$0xff] }
  0x39   :  { %207 = vmatpush.msra.mxu0 %v184_v14  ;;  %251 = vmatpush.msra.mxu1 %v230_v21  ;;  %v279_v56 = vld [vmem:[#allocation10 + $0x58] sm:$0xff]  ;;  %v276_v59 = vld [vmem:[#allocation10 + $0x40] sm:$0xff]  ;;  %v277_v60 = vld [vmem:[#allocation10 + $0x48] sm:$0xff] }
  0x3a   :  { %332 = vmatpush.msra.mxu3 %v293_v41  ;;  %310 = vmatpush.msra.mxu2 %v290_v42  ;;  %v274_v62 = vld [vmem:[#allocation10 + $0x30] sm:$0xff]  ;;  %v275_v63 = vld [vmem:[#allocation10 + $0x38] sm:$0xff]  ;;  %v272_v3 = vld [vmem:[#allocation10 + $0x20] sm:$0xff] }
  0x3b   :  { %208 = vmatpush.msra.mxu0 %v183_v16  ;;  %252 = vmatpush.msra.mxu1 %v229_v23  ;;  %v273_v4 = vld [vmem:[#allocation10 + $0x28] sm:$0xff]  ;;  %v270_v5 = vld [vmem:[#allocation10 + $0x10] sm:$0xff]  ;;  %v271_v6 = vld [vmem:[#allocation10 + $0x18] sm:$0xff] }
  0x3c   :  { %333 = vmatpush.msra.mxu3 %v291_v43  ;;  %311 = vmatpush.msra.mxu2 %v288_v44  ;;  %v268_v7 = vld [vmem:[#allocation10] sm:$0xff]  ;;  %v269_v8 = vld [vmem:[#allocation10 + $0x8] sm:$0xff]  ;;  %v379_v9 = vld [vmem:[#allocation11 + $0x78] sm:$0xff] }
  0x3d   :  { %209 = vmatpush.msra.mxu0 %v182_v18  ;;  %253 = vmatpush.msra.mxu1 %v228_v25  ;;  %v378_v10 = vld [vmem:[#allocation11 + $0x70] sm:$0xff]  ;;  %v377_v11 = vld [vmem:[#allocation11 + $0x68] sm:$0xff]  ;;  %v376_v12 = vld [vmem:[#allocation11 + $0x60] sm:$0xff] }
  0x3e   :  { %334 = vmatpush.msra.mxu3 %v289_v45  ;;  %312 = vmatpush.msra.mxu2 %v286_v46  ;;  %v375_v13 = vld [vmem:[#allocation11 + $0x58] sm:$0xff]  ;;  %v374_v14 = vld [vmem:[#allocation11 + $0x50] sm:$0xff]  ;;  %v373_v15 = vld [vmem:[#allocation11 + $0x48] sm:$0xff] }
  0x3f   :  { %210 = vmatpush.msra.mxu0 %v181_v20  ;;  %254 = vmatpush.msra.mxu1 %v227_v27  ;;  %v615_v16 = vld [vmem:[%s1062_s5] ss:$0 sm:$0xff]  ;;  %v370_v25 = vld [vmem:[#allocation11 + $0x30] sm:$0xff]  ;;  %v422_v35 = vld [vmem:[#allocation13 + $0x68] sm:$0xff] }
  0x40   :  { %335 = vmatpush.msra.mxu3 %v287_v47  ;;  %313 = vmatpush.msra.mxu2 %v284_v48  ;;  %v372_v23 = vld [vmem:[#allocation11 + $0x40] sm:$0xff]  ;;  %v423_v34 = vld [vmem:[#allocation13 + $0x70] sm:$0xff]  ;;  %v420_v41 = vld [vmem:[#allocation13 + $0x58] sm:$0xff] }
  0x41   :  { %211 = vmatpush.msra.mxu0 %v180_v22  ;;  %255 = vmatpush.msra.mxu1 %v226_v29  ;;  %v368_v27 = vld [vmem:[#allocation11 + $0x20] sm:$0xff]  ;;  %v366_v29 = vld [vmem:[#allocation11 + $0x10] sm:$0xff]  ;;  %v418_v46 = vld [vmem:[#allocation13 + $0x48] sm:$0xff] }
  0x42   :  { %336 = vmatpush.msra.mxu3 %v285_v49  ;;  %314 = vmatpush.msra.mxu2 %v282_v50  ;;  %v421_v38 = vld [vmem:[#allocation13 + $0x60] sm:$0xff]  ;;  %v419_v44 = vld [vmem:[#allocation13 + $0x50] sm:$0xff] }
  0x43   :  { %212 = vmatpush.msra.mxu0 %v179_v24  ;;  %256 = vmatpush.msra.mxu1 %v225_v31  ;;  %v371_v24 = vld [vmem:[#allocation11 + $0x38] sm:$0xff]  ;;  %v364_v31 = vld [vmem:[#allocation11] sm:$0xff] }
  0x44   :  { %337 = vmatpush.msra.mxu3 %v283_v51  ;;  %315 = vmatpush.msra.mxu2 %v280_v53  ;;  %v417_v48 = vld [vmem:[#allocation13 + $0x40] sm:$0xff]  ;;  %v416_v51 = vld [vmem:[#allocation13 + $0x38] sm:$0xff] }
  0x45   :  { %213 = vmatpush.msra.mxu0 %v178_v26  ;;  %257 = vmatpush.msra.mxu1 %v224_v32  ;;  %v369_v26 = vld [vmem:[#allocation11 + $0x28] sm:$0xff]  ;;  %v300_v32 = vld [vmem:[%s1064_s7] sm:$0x3] }
  0x46   :  { %214 = vmatmul.f32.vlgmr.msra.gmra.mxu0 %v176_v28  ;;  %338 = vmatpush.msra.mxu3 %v281_v54  ;;  %v367_v28 = vld [vmem:[#allocation11 + $0x18] sm:$0xff]  ;;  %v302_v36 = vperm.slane %v300_v32, 0  ;;  %v303_v37 = vperm.slane %v300_v32, 1  ;;  %v415_v54 = vld [vmem:[#allocation13 + $0x30] sm:$0xff] }
  0x47   :  { %258 = vmatpush.msra.mxu1 %v223_v33  ;;  %316 = vmatpush.msra.mxu2 %v278_v55  ;;  %v424_v33 = vld [vmem:[#allocation13 + $0x78] sm:$0xff] }
  0x48   :  { %339 = vmatpush.msra.mxu3 %v279_v56  ;;  %384 = vmatpush.msrb.mxu0 %v379_v9  ;;  %v352_v56 = vld [vmem:[#allocation5] sm:$0xff] }
  0x49   :  { %317 = vmatpush.msra.mxu2 %v276_v59  ;;  %429 = vmatpush.msrb.mxu1 %v424_v33 }
  0x4a   :  { %340 = vmatpush.msra.mxu3 %v277_v60  ;;  %385 = vmatpush.msrb.mxu0 %v378_v10 }
  0x4b   :  { %318 = vmatpush.msra.mxu2 %v274_v62  ;;  %430 = vmatpush.msrb.mxu1 %v423_v34 }
  0x4c   :  { %341 = vmatpush.msra.mxu3 %v275_v63  ;;  %386 = vmatpush.msrb.mxu0 %v377_v11  ;;  %v412_v63 = vld [vmem:[#allocation13 + $0x18] sm:$0xff] }
  0x4d   :  { %319 = vmatpush.msra.mxu2 %v272_v3  ;;  %431 = vmatpush.msrb.mxu1 %v422_v35 }
  0x4e   :  { %217 = vmatmul.f32.gmra.mxu0 %v177_v30  ;;  %342 = vmatpush.msra.mxu3 %v273_v4  ;;  %v365_v30 = vld [vmem:[#allocation11 + $0x8] sm:$0xff]  ;;  %v411_v4 = vld [vmem:[#allocation13 + $0x10] sm:$0xff] }
  0x4f   :  { %320 = vmatpush.msra.mxu2 %v270_v5  ;;  %387 = vmatpush.msrb.mxu0 %v376_v12  ;;  %v410_v5 = vld [vmem:[#allocation13 + $0x8] sm:$0xff] }
  0x50   :  { %343 = vmatpush.msra.mxu3 %v271_v6  ;;  %432 = vmatpush.msrb.mxu1 %v421_v38  ;;  %v409_v6 = vld [vmem:[#allocation13] sm:$0xff] }
  0x51   :  { %321 = vmatpush.msra.mxu2 %v268_v7  ;;  %388 = vmatpush.msrb.mxu0 %v375_v13  ;;  %v469_v7 = vld [vmem:[#allocation14 + $0x78] sm:$0xff] }
  0x52   :  { %344 = vmatpush.msra.mxu3 %v269_v8  ;;  %433 = vmatpush.msrb.mxu1 %v420_v41  ;;  %v468_v8 = vld [vmem:[#allocation14 + $0x70] sm:$0xff] }
  0x53   :  { %389 = vmatpush.msrb.mxu0 %v374_v14  ;;  %474 = vmatpush.msrb.mxu2 %v469_v7 }
  0x54   :  { %584 = vmatpush.msrb.mxu3 %v379_v9  ;;  %434 = vmatpush.msrb.mxu1 %v419_v44  ;;  %v467_v9 = vld [vmem:[#allocation14 + $0x68] sm:$0xff] }
  0x55   :  { %390 = vmatpush.msrb.mxu0 %v373_v15  ;;  %475 = vmatpush.msrb.mxu2 %v468_v8 }
  0x56   :  { %585 = vmatpush.msrb.mxu3 %v378_v10  ;;  %435 = vmatpush.msrb.mxu1 %v418_v46  ;;  %v466_v10 = vld [vmem:[#allocation14 + $0x60] sm:$0xff] }
  0x57   :  { %391 = vmatpush.msrb.mxu0 %v372_v23  ;;  %476 = vmatpush.msrb.mxu2 %v467_v9 }
  0x58   :  { %586 = vmatpush.msrb.mxu3 %v377_v11  ;;  %436 = vmatpush.msrb.mxu1 %v417_v48  ;;  %v465_v11 = vld [vmem:[#allocation14 + $0x58] sm:$0xff] }
  0x59   :  { %392 = vmatpush.msrb.mxu0 %v371_v24  ;;  %477 = vmatpush.msrb.mxu2 %v466_v10 }
  0x5a   :  { %587 = vmatpush.msrb.mxu3 %v376_v12  ;;  %437 = vmatpush.msrb.mxu1 %v416_v51  ;;  %v464_v12 = vld [vmem:[#allocation14 + $0x50] sm:$0xff] }
  0x5b   :  { %393 = vmatpush.msrb.mxu0 %v370_v25  ;;  %478 = vmatpush.msrb.mxu2 %v465_v11 }
  0x5c   :  { %588 = vmatpush.msrb.mxu3 %v375_v13  ;;  %438 = vmatpush.msrb.mxu1 %v415_v54  ;;  %v616_v13 = vld [vmem:[%s1066_s9] ss:$0 sm:$0xff] }
  0x5d   :  { %394 = vmatpush.msrb.mxu0 %v369_v26  ;;  %479 = vmatpush.msrb.mxu2 %v464_v12 }
  0x5e   :  { %589 = vmatpush.msrb.mxu3 %v374_v14  ;;  %v463_v14 = vld [vmem:[#allocation14 + $0x48] sm:$0xff] }
  0x5f   :  { %395 = vmatpush.msrb.mxu0 %v368_v27  ;;  %480 = vmatpush.msrb.mxu2 %v463_v14 }
  0x60   :  { %590 = vmatpush.msrb.mxu3 %v373_v15  ;;  %v462_v15 = vld [vmem:[#allocation14 + $0x40] sm:$0xff] }
  0x61   :  { %396 = vmatpush.msrb.mxu0 %v367_v28  ;;  %481 = vmatpush.msrb.mxu2 %v462_v15 }
  0x62   :  { %591 = vmatpush.msrb.mxu3 %v372_v23  ;;  %v457_v23 = vld [vmem:[#allocation14 + $0x18] sm:$0xff] }
  0x63   :  { %397 = vmatpush.msrb.mxu0 %v366_v29 }
  0x64   :  { %592 = vmatpush.msrb.mxu3 %v371_v24 }
  0x65   :  { %398 = vmatpush.msrb.mxu0 %v365_v30 }
  0x66   :  { %593 = vmatpush.msrb.mxu3 %v370_v25 }
  0x67   :  { %399 = vmatpush.msrb.mxu0 %v364_v31 }
  0x68   :  { %594 = vmatpush.msrb.mxu3 %v369_v26 }
  0x6a   :  { %595 = vmatpush.msrb.mxu3 %v368_v27  ;;  %v456_v27 = vld [vmem:[#allocation14 + $0x10] sm:$0xff] }
  0x6c   :  { %596 = vmatpush.msrb.mxu3 %v367_v28  ;;  %v455_v28 = vld [vmem:[#allocation14 + $0x8] sm:$0xff] }
  0x6e   :  { %597 = vmatpush.msrb.mxu3 %v366_v29  ;;  %v454_v29 = vld [vmem:[#allocation14] sm:$0xff] }
  0x70   :  { %598 = vmatpush.msrb.mxu3 %v365_v30  ;;  %v617_v30 = vld [vmem:[%s1068_s11] ss:$0 sm:$0xff] }
  0x72   :  { %599 = vmatpush.msrb.mxu3 %v364_v31 }
  0xc3   :  { %v215_v57 = vpop.f32.mrf.mxu0 }
  0xc4   :  { %v216_v58 = vadd.f32 %v614_v52, %v215_v57  ;;  %v414_v57 = vld [vmem:[#allocation13 + $0x28] sm:$0xff] }
  0xc5   :  { %439 = vmatpush.msrb.mxu1 %v414_v57 }
  0xc6   :  { %v221_v61 = vmax.f32 %v216_v58, 0.0 }
  0xc8   :  { %259 = vmatmul.f32.vlgmr.msra.gmra.mxu1 %v221_v61  ;;  %v413_v61 = vld [vmem:[#allocation13 + $0x20] sm:$0xff] }
  0xc9   :  { %440 = vmatpush.msrb.mxu1 %v413_v61 }
  0xcb   :  { %v218_v0 = vpop.f32.mrf.mxu0  ;;  %441 = vmatpush.msrb.mxu1 %v412_v63 }
  0xcc   :  { %v219_v1 = vadd.f32 %v614_v52, %v218_v0  ;;  %v353_v0 = vld [vmem:[#allocation5 + $0x8] sm:$0xff] }
  0xcd   :  { %442 = vmatpush.msrb.mxu1 %v411_v4 }
  0xce   :  { %v222_v2 = vmax.f32 %v219_v1, 0.0 }
  0xcf   :  { %443 = vmatpush.msrb.mxu1 %v410_v5 }
  0xd0   :  { %262 = vmatmul.f32.gmra.mxu1 %v222_v2 }
  0xd1   :  { %444 = vmatpush.msrb.mxu1 %v409_v6 }
 0x145   :  { %v260_v17 = vpop.f32.mrf.mxu1 }
 0x146   :  { %v261_v18 = vadd.f32 %v615_v16, %v260_v17 }
 0x148   :  { %v266_v19 = vmax.f32 %v261_v18, 0.0  ;;  %v461_v18 = vld [vmem:[#allocation14 + $0x38] sm:$0xff] }
 0x149   :  { %482 = vmatpush.msrb.mxu2 %v461_v18 }
 0x14a   :  { %322 = vmatmul.f32.vlgmr.msra.gmra.mxu2 %v266_v19  ;;  %345 = vmatmul.f32.vlgmr.msra.gmra.mxu3 %v266_v19 }
 0x14d   :  { %v263_v20 = vpop.f32.mrf.mxu1 }
 0x14e   :  { %v264_v21 = vadd.f32 %v615_v16, %v263_v20  ;;  %v460_v20 = vld [vmem:[#allocation14 + $0x30] sm:$0xff] }
 0x14f   :  { %483 = vmatpush.msrb.mxu2 %v460_v20 }
 0x150   :  { %v267_v22 = vmax.f32 %v264_v21, 0.0  ;;  %v459_v21 = vld [vmem:[#allocation14 + $0x28] sm:$0xff] }
 0x151   :  { %484 = vmatpush.msrb.mxu2 %v459_v21 }
 0x152   :  { %325 = vmatmul.f32.gmra.mxu2 %v267_v22  ;;  %348 = vmatmul.f32.gmra.mxu3 %v267_v22  ;;  %v458_v22 = vld [vmem:[#allocation14 + $0x20] sm:$0xff] }
 0x153   :  { %485 = vmatpush.msrb.mxu2 %v458_v22 }
 0x155   :  { %486 = vmatpush.msrb.mxu2 %v457_v23 }
 0x157   :  { %487 = vmatpush.msrb.mxu2 %v456_v27 }
 0x159   :  { %488 = vmatpush.msrb.mxu2 %v455_v28 }
 0x15b   :  { %489 = vmatpush.msrb.mxu2 %v454_v29 }
 0x1cd   :  { %v323_v39 = vpop.f32.mrf.mxu2  ;;  %v346_v40 = vpop.f32.mrf.mxu3 }
 0x1ce   :  { %v324_v42 = vadd.f32 %v323_v39, %v302_v36  ;;  %v347_v43 = vadd.f32 %v346_v40, %v303_v37 }
 0x1d0   :  { %537 = vst [vmem:[#allocation17] sm:$0xff] %v324_v42  ;;  %v354_v45 = vmul.f32 0.5, %v347_v43 }
 0x1d1   :  { %538 = vst [vmem:[#allocation17 + $0x8] sm:$0xff] %v347_v43 }
 0x1d2   :  { %v356_v47 = vmul.f32 1.442695, %v354_v45 }
 0x1d4   :  { %619 = vpow2.f32 %v356_v47 }
 0x1d5   :  { %v326_v49 = vpop.f32.mrf.mxu2  ;;  %v349_v50 = vpop.f32.mrf.mxu3 }
 0x1d6   :  { %v327_v52 = vadd.f32 %v326_v49, %v302_v36  ;;  %v350_v53 = vadd.f32 %v349_v50, %v303_v37  ;;  %v618_v37 = vld [vmem:[%s1070_s13] ss:$0 sm:$0xff]  ;;  %s898_s13 = smov [#allocation16]  }
 0x1d7   :  { %s545_s15 = sshll.u32 %s898_s13, 4  ;;  %s546_s15 = int_to_ptr.vmem [resolvable:$true] %s545_s15 }
 0x1d8   :  { %539 = vst [vmem:[#allocation17 + $0x10] sm:$0xff] %v327_v52  ;;  %v355_v55 = vmul.f32 0.5, %v350_v53 }
 0x1d9   :  { %540 = vst [vmem:[#allocation17 + $0x18] sm:$0xff] %v350_v53 }
 0x1da   :  { %v620_v58 = vpop.eup %619  ;;  %v358_v59 = vmul.f32 1.442695, %v355_v55  ;;  %566 = dma.vmem_to_hbm [thread:$0]  %s559_s16, 512, %s561_s18, [#allocation18], %s893_s1, %s893_s1, %s894_s4  }
 0x1db   :  { %v360_v60 = vmul.f32 %v620_v58, %v352_v56 }
 0x1dc   :  { %621 = vpow2.f32 %v358_v59 }
 0x1dd   :  { %v362_v62 = vadd.f32 %v360_v60, %v324_v42 }
 0x1df   :  { %400 = vmatmul.f32.vlgmr.msrb.gmra.mxu0 %v362_v62 }
 0x1e2   :  { %v622_v1 = vpop.eup %621 }
 0x1e3   :  { %v361_v2 = vmul.f32 %v622_v1, %v353_v0 }
 0x1e5   :  { %v363_v3 = vadd.f32 %v361_v2, %v327_v52 }
 0x1e7   :  { %403 = vmatmul.f32.vlgmr.msrb.gmra.mxu3 %v363_v3 }
 0x25c   :  { %v401_v16 = vpop.f32.mrf.mxu0 }
 0x25d   :  { %v402_v17 = vadd.f32 %v616_v13, %v401_v16 }
 0x25f   :  { %v407_v19 = vmax.f32 %v402_v17, 0.0 }
 0x261   :  { %445 = vmatmul.f32.vlgmr.msrb.gmra.mxu1 %v407_v19 }
 0x26a   :  { %v404_v24 = vpop.f32.mrf.mxu3 }
 0x26b   :  { %v405_v25 = vadd.f32 %v616_v13, %v404_v24 }
 0x26d   :  { %v408_v26 = vmax.f32 %v405_v25, 0.0 }
 0x26f   :  { %448 = vmatmul.f32.gmra.mxu1 %v408_v26 }
 0x2de   :  { %v446_v31 = vpop.f32.mrf.mxu1 }
 0x2df   :  { %v447_v32 = vadd.f32 %v617_v30, %v446_v31 }
 0x2e1   :  { %v452_v33 = vmax.f32 %v447_v32, 0.0 }
 0x2e3   :  { %490 = vmatmul.f32.vlgmr.msrb.gmra.mxu2 %v452_v33 }
 0x2ec   :  { %v449_v34 = vpop.f32.mrf.mxu1 }
 0x2ed   :  { %v450_v35 = vadd.f32 %v617_v30, %v449_v34 }
 0x2ef   :  { %v453_v36 = vmax.f32 %v450_v35, 0.0 }
 0x2f1   :  { %493 = vmatmul.f32.gmra.mxu2 %v453_v36 }
 0x366   :  { %v491_v38 = vpop.f32.mrf.mxu2 }
 0x367   :  { %v492_v39 = vadd.f32 %v618_v37, %v491_v38 }
 0x369   :  { %v582_v40 = vmul.f32 -1.442695, %v492_v39 }
 0x36b   :  { %623 = vpow2.f32 %v582_v40 }
 0x371   :  { %v624_v41 = vpop.eup %623 }
 0x372   :  { %v503_v42 = vadd.f32 1.0, %v624_v41 }
 0x374   :  { %625 = vrcp.f32 %v503_v42  ;;  %v494_v43 = vpop.f32.mrf.mxu2  ;;  %v516_v49 = vand.u32 2147483648, %v503_v42  ;;  %v514_v52 = vand.u32 2147483647, %v503_v42  ;;  %vm510_vm1 = vweird.f32 %v503_v42 }
 0x375   :  { %v495_v44 = vadd.f32 %v618_v37, %v494_v43 }
 0x376   :  { %v517_v55 = vor.u32 1.1754944e-38, %v516_v49  ;;  %vm515_vm3 = vcmp.eq.f32.partialorder %v514_v52, 8.507059e+37 }
 0x377   :  { %v583_v45 = vmul.f32 -1.442695, %v495_v44 }
 0x379   :  { %627 = vpow2.f32 %v583_v45 }
 0x37a   :  { %v626_v46 = vpop.eup %625 }
 0x37b   :  { %v506_v47 = vmul.f32 %v626_v46, %v503_v42  ;;  %vm511_vm0 = vweird.f32 %v626_v46 }
 0x37c   :  { %vm512_vm2 = vmor %vm510_vm1, %vm511_vm0 }
 0x37d   :  { %v507_v48 = vsub.f32 1.0, %v506_v47 }
 0x37f   :  { %v628_v50 = vpop.eup %627  ;;  %v508_v51 = vmul.f32 %v626_v46, %v507_v48 }
 0x380   :  { %v504_v53 = vadd.f32 1.0, %v628_v50 }
 0x381   :  { %v509_v54 = vadd.f32 %v626_v46, %v508_v51 }
 0x382   :  { %629 = vrcp.f32 %v504_v53  ;;  %v531_v61 = vand.u32 2147483648, %v504_v53  ;;  %v529_v63 = vand.u32 2147483647, %v504_v53  ;;  %vm525_vm5 = vweird.f32 %v504_v53 }
 0x383   :  { %v513_v56 = vsel %vm512_vm2, %v626_v46, %v509_v54 }
 0x384   :  { %v518_v57 = vsel %vm515_vm3, %v517_v55, %v513_v56  ;;  %v532_v1 = vor.u32 1.1754944e-38, %v531_v61  ;;  %vm530_vm7 = vcmp.eq.f32.partialorder %v529_v63, 8.507059e+37 }
 0x385   :  { %535 = vst [vmem:[#allocation16] sm:$0xff] %v518_v57 }
 0x388   :  { %v630_v58 = vpop.eup %629 }
 0x389   :  { %v521_v59 = vmul.f32 %v630_v58, %v504_v53  ;;  %vm526_vm4 = vweird.f32 %v630_v58 }
 0x38a   :  { %vm527_vm6 = vmor %vm525_vm5, %vm526_vm4 }
 0x38b   :  { %v522_v60 = vsub.f32 1.0, %v521_v59 }
 0x38d   :  { %v523_v62 = vmul.f32 %v630_v58, %v522_v60 }
 0x38f   :  { %v524_v0 = vadd.f32 %v630_v58, %v523_v62 }
 0x391   :  { %v528_v2 = vsel %vm527_vm6, %v630_v58, %v524_v0 }
 0x392   :  { %v533_v3 = vsel %vm530_vm7, %v532_v1, %v528_v2 }
 0x393   :  { %536 = vst [vmem:[#allocation16 + $0x8] sm:$0xff] %v533_v3 }
 0x394   :  { %553 = dma.vmem_to_hbm [thread:$0]  %s546_s15, 256, %s548_s19, [#allocation4], %s886_s26, %s886_s26, %s887_s27  }
 0x395   :  { %881 = dma.done.wait [#allocation4], 256  }
 0x396   :  { %882 = vsyncadd [#allocation4], 4294967040 }
 0x397   :  { %883 = dma.done.wait [#allocation18], 512  }
 0x398   :  { %884 = vsyncadd [#allocation18], 4294966784 }
 0x399   :  { %575 = vsyncpa [#allocation3], 1 }
 0x39a   :  { %576 = vsyncpa [#allocation6], 1 }
 0x39b   :  { %577 = vsyncpa [#allocation9], 1 }
 0x39c   :  { %578 = vsyncpa [#allocation12], 1 }
 0x39d   :  { %579 = vsyncpa [#allocation15], 1 }
 0x39e   :  { %580 = vsyncpa [#allocation4], 1 }
 0x39f   :  { %581 = vsyncpa [#allocation18], 1 }

// kernel: tpu_custom_call.1
= control target key start
LH: loop header
LB: loop body
LE: loop exit
PB: predicated region body
PF: predicated region fallthrough
CT: control target
= control target key end

     0   :  { %21 = vsyncpa [#allocation3], 0  ;;  %s1057_s0 = inlined_call_operand.hbm [shape: f32[16,128], index: 0, kind: input, shape index: {}]   ;;  %s1058_s1 = inlined_call_operand.hbm [shape: f32[16,128], index: 1, kind: input, shape index: {}]   ;;  %s1059_s2 = inlined_call_operand.hbm [shape: f32[128,128], index: 2, kind: input, shape index: {}]   ;;  %s1060_s3 = inlined_call_operand.vmem [shape: f32[1,128], index: 3, kind: input, shape index: {}]   ;;  %s1061_s4 = inlined_call_operand.hbm [shape: f32[128,128], index: 4, kind: input, shape index: {}]   ;;  %s1062_s5 = inlined_call_operand.vmem [shape: f32[1,128], index: 5, kind: input, shape index: {}]   ;;  %s1063_s6 = inlined_call_operand.hbm [shape: f32[128,256], index: 6, kind: input, shape index: {}]   ;;  %s1064_s7 = inlined_call_operand.vmem [shape: f32[1,256], index: 7, kind: input, shape index: {}]   ;;  %s1065_s8 = inlined_call_operand.hbm [shape: f32[128,128], index: 8, kind: input, shape index: {}]   ;;  %s1066_s9 = inlined_call_operand.vmem [shape: f32[1,128], index: 9, kind: input, shape index: {}]   ;;  %s1067_s10 = inlined_call_operand.hbm [shape: f32[128,128], index: 10, kind: input, shape index: {}]   ;;  %s1068_s11 = inlined_call_operand.vmem [shape: f32[1,128], index: 11, kind: input, shape index: {}]   ;;  %s1069_s12 = inlined_call_operand.hbm [shape: f32[128,128], index: 12, kind: input, shape index: {}]   ;;  %s1070_s13 = inlined_call_operand.vmem [shape: f32[1,128], index: 13, kind: input, shape index: {}]   ;;  %s1071_s14 = inlined_call_operand.hbm [shape: f32[16,128], index: 14, kind: output, shape index: {0}]   ;;  %s1072_s15 = inlined_call_operand.hbm [shape: f32[16,256], index: 15, kind: output, shape index: {1}]  }
   0x1   :  { %22 = vsyncpa [#allocation6], 0 }
   0x2   :  { %23 = vsyncpa [#allocation9], 0 }
   0x3   :  { %24 = vsyncpa [#allocation12], 0 }
   0x4   :  { %25 = vsyncpa [#allocation15], 0 }
   0x5   :  { %26 = vsyncpa [#allocation4], 0 }
   0x6   :  { %27 = vsyncpa [#allocation18], 0  ;;  %s45_s20 = sshll.u32 %s1058_s1, 4  ;;  %s885_s21 = smov [#allocation5]   ;;  %s46_s20 = int_to_ptr.hbm [resolvable:$true] %s45_s20 }
   0x7   :  { %s47_s22 = sshll.u32 %s885_s21, 4  ;;  %s73_s25 = sshll.u32 %s1061_s4, 4  ;;  %s48_s22 = int_to_ptr.vmem [resolvable:$true] %s47_s22  ;;  %s74_s25 = int_to_ptr.hbm [resolvable:$true] %s73_s25 }
   0x8   :  { %s886_s26 = smov 128   ;;  %s887_s27 = smov 8  }
   0x9   :  { %53 = dma.hbm_to_vmem [thread:$0]  %s46_s20, 256, %s48_s22, [#allocation6], %s886_s26, %s886_s26, %s887_s27  }
   0xa   :  { %s888_s28 = smov [#allocation8]   ;;  %s103_s1 = sshll.u32 %s1065_s8, 4  ;;  %s104_s1 = int_to_ptr.hbm [resolvable:$true] %s103_s1 }
   0xb   :  { %s75_s29 = sshll.u32 %s888_s28, 4  ;;  %s32_s18 = sshll.u32 %s1057_s0, 4  ;;  %s76_s29 = int_to_ptr.vmem [resolvable:$true] %s75_s29  ;;  %s33_s18 = int_to_ptr.hbm [resolvable:$true] %s32_s18 }
   0xc   :  { %81 = dma.hbm_to_vmem [thread:$0]  %s74_s25, 2048, %s76_s29, [#allocation9], %s886_s26, %s886_s26, %s887_s27  }
   0xd   :  { %s889_s19 = smov [#allocation11]   ;;  %s890_s20 = smov [#allocation2]  }
   0xe   :  { %s105_s21 = sshll.u32 %s889_s19, 4  ;;  %s34_s8 = sshll.u32 %s890_s20, 4  ;;  %s106_s21 = int_to_ptr.vmem [resolvable:$true] %s105_s21  ;;  %s35_s8 = int_to_ptr.vmem [resolvable:$true] %s34_s8 }
   0xf   :  { %111 = dma.hbm_to_vmem [thread:$0]  %s104_s1, 2048, %s106_s21, [#allocation12], %s886_s26, %s886_s26, %s887_s27  }
  0x10   :  { %s58_s24 = sshll.u32 %s1059_s2, 4  ;;  %s88_s28 = sshll.u32 %s1063_s6, 4  ;;  %s59_s24 = int_to_ptr.hbm [resolvable:$true] %s58_s24  ;;  %s89_s28 = int_to_ptr.hbm [resolvable:$true] %s88_s28 }
  0x11   :  { %40 = dma.hbm_to_vmem [thread:$0]  %s33_s18, 256, %s35_s8, [#allocation3], %s886_s26, %s886_s26, %s887_s27  }
  0x12   :  { %s891_s29 = smov [#allocation7]   ;;  %s892_s16 = smov [#allocation10]  }
  0x13   :  { %s60_s30 = sshll.u32 %s891_s29, 4  ;;  %s90_s2 = sshll.u32 %s892_s16, 4  ;;  %s61_s30 = int_to_ptr.vmem [resolvable:$true] %s60_s30  ;;  %s91_s2 = int_to_ptr.vmem [resolvable:$true] %s90_s2 }
  0x14   :  { %66 = dma.hbm_to_vmem [thread:$0]  %s59_s24, 2048, %s61_s30, [#allocation6], %s886_s26, %s886_s26, %s887_s27  }
  0x15   :  { %s893_s1 = smov 256   ;;  %s894_s4 = smov 16  }
  0x16   :  { %96 = dma.hbm_to_vmem [thread:$0]  %s89_s28, 4096, %s91_s2, [#allocation9], %s893_s1, %s893_s1, %s894_s4  }
  0x17   :  { %s118_s6 = sshll.u32 %s1067_s10, 4  ;;  %s895_s19 = smov [#allocation13]   ;;  %s119_s6 = int_to_ptr.hbm [resolvable:$true] %s118_s6 }
  0x18   :  { %s120_s21 = sshll.u32 %s895_s19, 4  ;;  %s133_s22 = sshll.u32 %s1069_s12, 4  ;;  %s121_s21 = int_to_ptr.vmem [resolvable:$true] %s120_s21  ;;  %s134_s22 = int_to_ptr.hbm [resolvable:$true] %s133_s22 }
  0x19   :  { %126 = dma.hbm_to_vmem [thread:$0]  %s119_s6, 2048, %s121_s21, [#allocation12], %s886_s26, %s886_s26, %s887_s27  }
  0x1a   :  { %s896_s23 = smov [#allocation14]  }
  0x1b   :  { %s135_s24 = sshll.u32 %s896_s23, 4  ;;  %s136_s24 = int_to_ptr.vmem [resolvable:$true] %s135_s24 }
  0x1c   :  { %141 = dma.hbm_to_vmem [thread:$0]  %s134_s22, 2048, %s136_s24, [#allocation15], %s886_s26, %s886_s26, %s887_s27  }
  0x1d   :  { %871 = dma.done.wait [#allocation3], 256  }
  0x1e   :  { %872 = vsyncadd [#allocation3], 4294967040 }
  0x1f   :  { %873 = dma.done.wait [#allocation6], 2304  }
  0x20   :  { %874 = vsyncadd [#allocation6], 4294964992 }
  0x21   :  { %875 = dma.done.wait [#allocation9], 6144  }
  0x22   :  { %876 = vsyncadd [#allocation9], 4294961152 }
  0x23   :  { %877 = dma.done.wait [#allocation12], 4096  }
  0x24   :  { %878 = vsyncadd [#allocation12], 4294963200 }
  0x25   :  { %879 = dma.done.wait [#allocation15], 2048  }
  0x26   :  { %880 = vsyncadd [#allocation15], 4294965248  ;;  %v193_v0 = vld [vmem:[#allocation7 + $0x78] sm:$0xff]  ;;  %v192_v1 = vld [vmem:[#allocation7 + $0x70] sm:$0xff]  ;;  %s897_s30 = smov [#allocation17]   ;;  %s560_s18 = sshll.u32 %s1072_s15, 4  ;;  %s561_s18 = int_to_ptr.hbm [resolvable:$true] %s560_s18 }
  0x27   :  { %198 = vmatpush.msra.mxu0 %v193_v0  ;;  %v191_v2 = vld [vmem:[#allocation7 + $0x68] sm:$0xff]  ;;  %v190_v3 = vld [vmem:[#allocation7 + $0x60] sm:$0xff]  ;;  %v189_v4 = vld [vmem:[#allocation7 + $0x58] sm:$0xff]  ;;  %s558_s16 = sshll.u32 %s897_s30, 4  ;;  %s547_s19 = sshll.u32 %s1071_s14, 4  ;;  %s559_s16 = int_to_ptr.vmem [resolvable:$true] %s558_s16  ;;  %s548_s19 = int_to_ptr.hbm [resolvable:$true] %s547_s19 }
  0x28   :  { %v188_v5 = vld [vmem:[#allocation7 + $0x50] sm:$0xff]  ;;  %v238_v6 = vld [vmem:[#allocation8 + $0x78] sm:$0xff]  ;;  %v187_v8 = vld [vmem:[#allocation7 + $0x48] sm:$0xff] }
  0x29   :  { %199 = vmatpush.msra.mxu0 %v192_v1  ;;  %v237_v7 = vld [vmem:[#allocation8 + $0x70] sm:$0xff]  ;;  %243 = vmatpush.msra.mxu1 %v238_v6  ;;  %v236_v9 = vld [vmem:[#allocation8 + $0x68] sm:$0xff]  ;;  %v186_v10 = vld [vmem:[#allocation7 + $0x40] sm:$0xff] }
  0x2a   :  { %v235_v11 = vld [vmem:[#allocation8 + $0x60] sm:$0xff]  ;;  %v185_v12 = vld [vmem:[#allocation7 + $0x38] sm:$0xff]  ;;  %v184_v14 = vld [vmem:[#allocation7 + $0x30] sm:$0xff] }
  0x2b   :  { %200 = vmatpush.msra.mxu0 %v191_v2  ;;  %244 = vmatpush.msra.mxu1 %v237_v7  ;;  %v234_v13 = vld [vmem:[#allocation8 + $0x58] sm:$0xff]  ;;  %v233_v15 = vld [vmem:[#allocation8 + $0x50] sm:$0xff]  ;;  %v183_v16 = vld [vmem:[#allocation7 + $0x28] sm:$0xff] }
  0x2c   :  { %v232_v17 = vld [vmem:[#allocation8 + $0x48] sm:$0xff]  ;;  %v182_v18 = vld [vmem:[#allocation7 + $0x20] sm:$0xff]  ;;  %v181_v20 = vld [vmem:[#allocation7 + $0x18] sm:$0xff] }
  0x2d   :  { %201 = vmatpush.msra.mxu0 %v190_v3  ;;  %245 = vmatpush.msra.mxu1 %v236_v9  ;;  %v231_v19 = vld [vmem:[#allocation8 + $0x40] sm:$0xff]  ;;  %v230_v21 = vld [vmem:[#allocation8 + $0x38] sm:$0xff]  ;;  %v180_v22 = vld [vmem:[#allocation7 + $0x10] sm:$0xff] }
  0x2e   :  { %v229_v23 = vld [vmem:[#allocation8 + $0x30] sm:$0xff]  ;;  %v179_v24 = vld [vmem:[#allocation7 + $0x8] sm:$0xff]  ;;  %v178_v26 = vld [vmem:[#allocation7] sm:$0xff] }
  0x2f   :  { %202 = vmatpush.msra.mxu0 %v189_v4  ;;  %246 = vmatpush.msra.mxu1 %v235_v11  ;;  %v228_v25 = vld [vmem:[#allocation8 + $0x28] sm:$0xff]  ;;  %v227_v27 = vld [vmem:[#allocation8 + $0x20] sm:$0xff]  ;;  %v226_v29 = vld [vmem:[#allocation8 + $0x18] sm:$0xff] }
  0x30   :  { %v176_v28 = vld [vmem:[#allocation2] sm:$0xff]  ;;  %v177_v30 = vld [vmem:[#allocation2 + $0x8] sm:$0xff]  ;;  %v225_v31 = vld [vmem:[#allocation8 + $0x10] sm:$0xff] }
  0x31   :  { %203 = vmatpush.msra.mxu0 %v188_v5  ;;  %247 = vmatpush.msra.mxu1 %v234_v13  ;;  %v224_v32 = vld [vmem:[#allocation8 + $0x8] sm:$0xff]  ;;  %v223_v33 = vld [vmem:[#allocation8] sm:$0xff]  ;;  %v298_v34 = vld [vmem:[#allocation10 + $0xf0] sm:$0xff] }
  0x32   :  { %v299_v35 = vld [vmem:[#allocation10 + $0xf8] sm:$0xff]  ;;  %v296_v36 = vld [vmem:[#allocation10 + $0xe0] sm:$0xff]  ;;  %306 = vmatpush.msra.mxu2 %v298_v34  ;;  %v297_v37 = vld [vmem:[#allocation10 + $0xe8] sm:$0xff] }
  0x33   :  { %204 = vmatpush.msra.mxu0 %v187_v8  ;;  %248 = vmatpush.msra.mxu1 %v233_v15  ;;  %v294_v38 = vld [vmem:[#allocation10 + $0xd0] sm:$0xff]  ;;  %v295_v39 = vld [vmem:[#allocation10 + $0xd8] sm:$0xff]  ;;  %v292_v40 = vld [vmem:[#allocation10 + $0xc0] sm:$0xff] }
  0x34   :  { %329 = vmatpush.msra.mxu3 %v299_v35  ;;  %307 = vmatpush.msra.mxu2 %v296_v36  ;;  %v293_v41 = vld [vmem:[#allocation10 + $0xc8] sm:$0xff]  ;;  %v290_v42 = vld [vmem:[#allocation10 + $0xb0] sm:$0xff]  ;;  %v291_v43 = vld [vmem:[#allocation10 + $0xb8] sm:$0xff] }
  0x35   :  { %205 = vmatpush.msra.mxu0 %v186_v10  ;;  %249 = vmatpush.msra.mxu1 %v232_v17  ;;  %v288_v44 = vld [vmem:[#allocation10 + $0xa0] sm:$0xff]  ;;  %v289_v45 = vld [vmem:[#allocation10 + $0xa8] sm:$0xff]  ;;  %v286_v46 = vld [vmem:[#allocation10 + $0x90] sm:$0xff] }
  0x36   :  { %330 = vmatpush.msra.mxu3 %v297_v37  ;;  %308 = vmatpush.msra.mxu2 %v294_v38  ;;  %v287_v47 = vld [vmem:[#allocation10 + $0x98] sm:$0xff]  ;;  %v284_v48 = vld [vmem:[#allocation10 + $0x80] sm:$0xff]  ;;  %v285_v49 = vld [vmem:[#allocation10 + $0x88] sm:$0xff] }
  0x37   :  { %206 = vmatpush.msra.mxu0 %v185_v12  ;;  %250 = vmatpush.msra.mxu1 %v231_v19  ;;  %v282_v50 = vld [vmem:[#allocation10 + $0x70] sm:$0xff]  ;;  %v283_v51 = vld [vmem:[#allocation10 + $0x78] sm:$0xff]  ;;  %v614_v52 = vld [vmem:[%s1060_s3] ss:$0 sm:$0xff] }
  0x38   :  { %331 = vmatpush.msra.mxu3 %v295_v39  ;;  %309 = vmatpush.msra.mxu2 %v292_v40  ;;  %v280_v53 = vld [vmem:[#allocation10 + $0x60] sm:$0xff]  ;;  %v281_v54 = vld [vmem:[#allocation10 + $0x68] sm:$0xff]  ;;  %v278_v55 = vld [vmem:[#allocation10 + $0x50] sm:$0xff] }
  0x39   :  { %207 = vmatpush.msra.mxu0 %v184_v14  ;;  %251 = vmatpush.msra.mxu1 %v230_v21  ;;  %v279_v56 = vld [vmem:[#allocation10 + $0x58] sm:$0xff]  ;;  %v276_v59 = vld [vmem:[#allocation10 + $0x40] sm:$0xff]  ;;  %v277_v60 = vld [vmem:[#allocation10 + $0x48] sm:$0xff] }
  0x3a   :  { %332 = vmatpush.msra.mxu3 %v293_v41  ;;  %310 = vmatpush.msra.mxu2 %v290_v42  ;;  %v274_v62 = vld [vmem:[#allocation10 + $0x30] sm:$0xff]  ;;  %v275_v63 = vld [vmem:[#allocation10 + $0x38] sm:$0xff]  ;;  %v272_v3 = vld [vmem:[#allocation10 + $0x20] sm:$0xff] }
  0x3b   :  { %208 = vmatpush.msra.mxu0 %v183_v16  ;;  %252 = vmatpush.msra.mxu1 %v229_v23  ;;  %v273_v4 = vld [vmem:[#allocation10 + $0x28] sm:$0xff]  ;;  %v270_v5 = vld [vmem:[#allocation10 + $0x10] sm:$0xff]  ;;  %v271_v6 = vld [vmem:[#allocation10 + $0x18] sm:$0xff] }
  0x3c   :  { %333 = vmatpush.msra.mxu3 %v291_v43  ;;  %311 = vmatpush.msra.mxu2 %v288_v44  ;;  %v268_v7 = vld [vmem:[#allocation10] sm:$0xff]  ;;  %v269_v8 = vld [vmem:[#allocation10 + $0x8] sm:$0xff]  ;;  %v379_v9 = vld [vmem:[#allocation11 + $0x78] sm:$0xff] }
  0x3d   :  { %209 = vmatpush.msra.mxu0 %v182_v18  ;;  %253 = vmatpush.msra.mxu1 %v228_v25  ;;  %v378_v10 = vld [vmem:[#allocation11 + $0x70] sm:$0xff]  ;;  %v377_v11 = vld [vmem:[#allocation11 + $0x68] sm:$0xff]  ;;  %v376_v12 = vld [vmem:[#allocation11 + $0x60] sm:$0xff] }
  0x3e   :  { %334 = vmatpush.msra.mxu3 %v289_v45  ;;  %312 = vmatpush.msra.mxu2 %v286_v46  ;;  %v375_v13 = vld [vmem:[#allocation11 + $0x58] sm:$0xff]  ;;  %v374_v14 = vld [vmem:[#allocation11 + $0x50] sm:$0xff]  ;;  %v373_v15 = vld [vmem:[#allocation11 + $0x48] sm:$0xff] }
  0x3f   :  { %210 = vmatpush.msra.mxu0 %v181_v20  ;;  %254 = vmatpush.msra.mxu1 %v227_v27  ;;  %v615_v16 = vld [vmem:[%s1062_s5] ss:$0 sm:$0xff]  ;;  %v370_v25 = vld [vmem:[#allocation11 + $0x30] sm:$0xff]  ;;  %v422_v35 = vld [vmem:[#allocation13 + $0x68] sm:$0xff] }
  0x40   :  { %335 = vmatpush.msra.mxu3 %v287_v47  ;;  %313 = vmatpush.msra.mxu2 %v284_v48  ;;  %v372_v23 = vld [vmem:[#allocation11 + $0x40] sm:$0xff]  ;;  %v423_v34 = vld [vmem:[#allocation13 + $0x70] sm:$0xff]  ;;  %v420_v41 = vld [vmem:[#allocation13 + $0x58] sm:$0xff] }
  0x41   :  { %211 = vmatpush.msra.mxu0 %v180_v22  ;;  %255 = vmatpush.msra.mxu1 %v226_v29  ;;  %v368_v27 = vld [vmem:[#allocation11 + $0x20] sm:$0xff]  ;;  %v366_v29 = vld [vmem:[#allocation11 + $0x10] sm:$0xff]  ;;  %v418_v46 = vld [vmem:[#allocation13 + $0x48] sm:$0xff] }
  0x42   :  { %336 = vmatpush.msra.mxu3 %v285_v49  ;;  %314 = vmatpush.msra.mxu2 %v282_v50  ;;  %v421_v38 = vld [vmem:[#allocation13 + $0x60] sm:$0xff]  ;;  %v419_v44 = vld [vmem:[#allocation13 + $0x50] sm:$0xff] }
  0x43   :  { %212 = vmatpush.msra.mxu0 %v179_v24  ;;  %256 = vmatpush.msra.mxu1 %v225_v31  ;;  %v371_v24 = vld [vmem:[#allocation11 + $0x38] sm:$0xff]  ;;  %v364_v31 = vld [vmem:[#allocation11] sm:$0xff] }
  0x44   :  { %337 = vmatpush.msra.mxu3 %v283_v51  ;;  %315 = vmatpush.msra.mxu2 %v280_v53  ;;  %v417_v48 = vld [vmem:[#allocation13 + $0x40] sm:$0xff]  ;;  %v416_v51 = vld [vmem:[#allocation13 + $0x38] sm:$0xff] }
  0x45   :  { %213 = vmatpush.msra.mxu0 %v178_v26  ;;  %257 = vmatpush.msra.mxu1 %v224_v32  ;;  %v369_v26 = vld [vmem:[#allocation11 + $0x28] sm:$0xff]  ;;  %v300_v32 = vld [vmem:[%s1064_s7] sm:$0x3] }
  0x46   :  { %214 = vmatmul.f32.vlgmr.msra.gmra.mxu0 %v176_v28  ;;  %338 = vmatpush.msra.mxu3 %v281_v54  ;;  %v367_v28 = vld [vmem:[#allocation11 + $0x18] sm:$0xff]  ;;  %v302_v36 = vperm.slane %v300_v32, 0  ;;  %v303_v37 = vperm.slane %v300_v32, 1  ;;  %v415_v54 = vld [vmem:[#allocation13 + $0x30] sm:$0xff] }
  0x47   :  { %258 = vmatpush.msra.mxu1 %v223_v33  ;;  %316 = vmatpush.msra.mxu2 %v278_v55  ;;  %v424_v33 = vld [vmem:[#allocation13 + $0x78] sm:$0xff] }
  0x48   :  { %339 = vmatpush.msra.mxu3 %v279_v56  ;;  %384 = vmatpush.msrb.mxu0 %v379_v9  ;;  %v352_v56 = vld [vmem:[#allocation5] sm:$0xff] }
  0x49   :  { %317 = vmatpush.msra.mxu2 %v276_v59  ;;  %429 = vmatpush.msrb.mxu1 %v424_v33 }
  0x4a   :  { %340 = vmatpush.msra.mxu3 %v277_v60  ;;  %385 = vmatpush.msrb.mxu0 %v378_v10 }
  0x4b   :  { %318 = vmatpush.msra.mxu2 %v274_v62  ;;  %430 = vmatpush.msrb.mxu1 %v423_v34 }
  0x4c   :  { %341 = vmatpush.msra.mxu3 %v275_v63  ;;  %386 = vmatpush.msrb.mxu0 %v377_v11  ;;  %v412_v63 = vld [vmem:[#allocation13 + $0x18] sm:$0xff] }
  0x4d   :  { %319 = vmatpush.msra.mxu2 %v272_v3  ;;  %431 = vmatpush.msrb.mxu1 %v422_v35 }
  0x4e   :  { %217 = vmatmul.f32.gmra.mxu0 %v177_v30  ;;  %342 = vmatpush.msra.mxu3 %v273_v4  ;;  %v365_v30 = vld [vmem:[#allocation11 + $0x8] sm:$0xff]  ;;  %v411_v4 = vld [vmem:[#allocation13 + $0x10] sm:$0xff] }
  0x4f   :  { %320 = vmatpush.msra.mxu2 %v270_v5  ;;  %387 = vmatpush.msrb.mxu0 %v376_v12  ;;  %v410_v5 = vld [vmem:[#allocation13 + $0x8] sm:$0xff] }
  0x50   :  { %343 = vmatpush.msra.mxu3 %v271_v6  ;;  %432 = vmatpush.msrb.mxu1 %v421_v38  ;;  %v409_v6 = vld [vmem:[#allocation13] sm:$0xff] }
  0x51   :  { %321 = vmatpush.msra.mxu2 %v268_v7  ;;  %388 = vmatpush.msrb.mxu0 %v375_v13  ;;  %v469_v7 = vld [vmem:[#allocation14 + $0x78] sm:$0xff] }
  0x52   :  { %344 = vmatpush.msra.mxu3 %v269_v8  ;;  %433 = vmatpush.msrb.mxu1 %v420_v41  ;;  %v468_v8 = vld [vmem:[#allocation14 + $0x70] sm:$0xff] }
  0x53   :  { %389 = vmatpush.msrb.mxu0 %v374_v14  ;;  %474 = vmatpush.msrb.mxu2 %v469_v7 }
  0x54   :  { %584 = vmatpush.msrb.mxu3 %v379_v9  ;;  %434 = vmatpush.msrb.mxu1 %v419_v44  ;;  %v467_v9 = vld [vmem:[#allocation14 + $0x68] sm:$0xff] }
  0x55   :  { %390 = vmatpush.msrb.mxu0 %v373_v15  ;;  %475 = vmatpush.msrb.mxu2 %v468_v8 }
  0x56   :  { %585 = vmatpush.msrb.mxu3 %v378_v10  ;;  %435 = vmatpush.msrb.mxu1 %v418_v46  ;;  %v466_v10 = vld [vmem:[#allocation14 + $0x60] sm:$0xff] }
  0x57   :  { %391 = vmatpush.msrb.mxu0 %v372_v23  ;;  %476 = vmatpush.msrb.mxu2 %v467_v9 }
  0x58   :  { %586 = vmatpush.msrb.mxu3 %v377_v11  ;;  %436 = vmatpush.msrb.mxu1 %v417_v48  ;;  %v465_v11 = vld [vmem:[#allocation14 + $0x58] sm:$0xff] }
  0x59   :  { %392 = vmatpush.msrb.mxu0 %v371_v24  ;;  %477 = vmatpush.msrb.mxu2 %v466_v10 }
  0x5a   :  { %587 = vmatpush.msrb.mxu3 %v376_v12  ;;  %437 = vmatpush.msrb.mxu1 %v416_v51  ;;  %v464_v12 = vld [vmem:[#allocation14 + $0x50] sm:$0xff] }
  0x5b   :  { %393 = vmatpush.msrb.mxu0 %v370_v25  ;;  %478 = vmatpush.msrb.mxu2 %v465_v11 }
  0x5c   :  { %588 = vmatpush.msrb.mxu3 %v375_v13  ;;  %438 = vmatpush.msrb.mxu1 %v415_v54  ;;  %v616_v13 = vld [vmem:[%s1066_s9] ss:$0 sm:$0xff] }
  0x5d   :  { %394 = vmatpush.msrb.mxu0 %v369_v26  ;;  %479 = vmatpush.msrb.mxu2 %v464_v12 }
  0x5e   :  { %589 = vmatpush.msrb.mxu3 %v374_v14  ;;  %v463_v14 = vld [vmem:[#allocation14 + $0x48] sm:$0xff] }
  0x5f   :  { %395 = vmatpush.msrb.mxu0 %v368_v27  ;;  %480 = vmatpush.msrb.mxu2 %v463_v14 }
  0x60   :  { %590 = vmatpush.msrb.mxu3 %v373_v15  ;;  %v462_v15 = vld [vmem:[#allocation14 + $0x40] sm:$0xff] }
  0x61   :  { %396 = vmatpush.msrb.mxu0 %v367_v28  ;;  %481 = vmatpush.msrb.mxu2 %v462_v15 }
  0x62   :  { %591 = vmatpush.msrb.mxu3 %v372_v23  ;;  %v457_v23 = vld [vmem:[#allocation14 + $0x18] sm:$0xff] }
  0x63   :  { %397 = vmatpush.msrb.mxu0 %v366_v29 }
  0x64   :  { %592 = vmatpush.msrb.mxu3 %v371_v24 }
  0x65   :  { %398 = vmatpush.msrb.mxu0 %v365_v30 }
  0x66   :  { %593 = vmatpush.msrb.mxu3 %v370_v25 }
  0x67   :  { %399 = vmatpush.msrb.mxu0 %v364_v31 }
  0x68   :  { %594 = vmatpush.msrb.mxu3 %v369_v26 }
  0x6a   :  { %595 = vmatpush.msrb.mxu3 %v368_v27  ;;  %v456_v27 = vld [vmem:[#allocation14 + $0x10] sm:$0xff] }
  0x6c   :  { %596 = vmatpush.msrb.mxu3 %v367_v28  ;;  %v455_v28 = vld [vmem:[#allocation14 + $0x8] sm:$0xff] }
  0x6e   :  { %597 = vmatpush.msrb.mxu3 %v366_v29  ;;  %v454_v29 = vld [vmem:[#allocation14] sm:$0xff] }
  0x70   :  { %598 = vmatpush.msrb.mxu3 %v365_v30  ;;  %v617_v30 = vld [vmem:[%s1068_s11] ss:$0 sm:$0xff] }
  0x72   :  { %599 = vmatpush.msrb.mxu3 %v364_v31 }
  0xc3   :  { %v215_v57 = vpop.f32.mrf.mxu0 }
  0xc4   :  { %v216_v58 = vadd.f32 %v614_v52, %v215_v57  ;;  %v414_v57 = vld [vmem:[#allocation13 + $0x28] sm:$0xff] }
  0xc5   :  { %439 = vmatpush.msrb.mxu1 %v414_v57 }
  0xc6   :  { %v221_v61 = vmax.f32 %v216_v58, 0.0 }
  0xc8   :  { %259 = vmatmul.f32.vlgmr.msra.gmra.mxu1 %v221_v61  ;;  %v413_v61 = vld [vmem:[#allocation13 + $0x20] sm:$0xff] }
  0xc9   :  { %440 = vmatpush.msrb.mxu1 %v413_v61 }
  0xcb   :  { %v218_v0 = vpop.f32.mrf.mxu0  ;;  %441 = vmatpush.msrb.mxu1 %v412_v63 }
  0xcc   :  { %v219_v1 = vadd.f32 %v614_v52, %v218_v0  ;;  %v353_v0 = vld [vmem:[#allocation5 + $0x8] sm:$0xff] }
  0xcd   :  { %442 = vmatpush.msrb.mxu1 %v411_v4 }
  0xce   :  { %v222_v2 = vmax.f32 %v219_v1, 0.0 }
  0xcf   :  { %443 = vmatpush.msrb.mxu1 %v410_v5 }
  0xd0   :  { %262 = vmatmul.f32.gmra.mxu1 %v222_v2 }
  0xd1   :  { %444 = vmatpush.msrb.mxu1 %v409_v6 }
 0x145   :  { %v260_v17 = vpop.f32.mrf.mxu1 }
 0x146   :  { %v261_v18 = vadd.f32 %v615_v16, %v260_v17 }
 0x148   :  { %v266_v19 = vmax.f32 %v261_v18, 0.0  ;;  %v461_v18 = vld [vmem:[#allocation14 + $0x38] sm:$0xff] }
 0x149   :  { %482 = vmatpush.msrb.mxu2 %v461_v18 }
 0x14a   :  { %322 = vmatmul.f32.vlgmr.msra.gmra.mxu2 %v266_v19  ;;  %345 = vmatmul.f32.vlgmr.msra.gmra.mxu3 %v266_v19 }
 0x14d   :  { %v263_v20 = vpop.f32.mrf.mxu1 }
 0x14e   :  { %v264_v21 = vadd.f32 %v615_v16, %v263_v20  ;;  %v460_v20 = vld [vmem:[#allocation14 + $0x30] sm:$0xff] }
 0x14f   :  { %483 = vmatpush.msrb.mxu2 %v460_v20 }
 0x150   :  { %v267_v22 = vmax.f32 %v264_v21, 0.0  ;;  %v459_v21 = vld [vmem:[#allocation14 + $0x28] sm:$0xff] }
 0x151   :  { %484 = vmatpush.msrb.mxu2 %v459_v21 }
 0x152   :  { %325 = vmatmul.f32.gmra.mxu2 %v267_v22  ;;  %348 = vmatmul.f32.gmra.mxu3 %v267_v22  ;;  %v458_v22 = vld [vmem:[#allocation14 + $0x20] sm:$0xff] }
 0x153   :  { %485 = vmatpush.msrb.mxu2 %v458_v22 }
 0x155   :  { %486 = vmatpush.msrb.mxu2 %v457_v23 }
 0x157   :  { %487 = vmatpush.msrb.mxu2 %v456_v27 }
 0x159   :  { %488 = vmatpush.msrb.mxu2 %v455_v28 }
 0x15b   :  { %489 = vmatpush.msrb.mxu2 %v454_v29 }
 0x1cd   :  { %v323_v39 = vpop.f32.mrf.mxu2  ;;  %v346_v40 = vpop.f32.mrf.mxu3 }
 0x1ce   :  { %v324_v42 = vadd.f32 %v323_v39, %v302_v36  ;;  %v347_v43 = vadd.f32 %v346_v40, %v303_v37 }
 0x1d0   :  { %537 = vst [vmem:[#allocation17] sm:$0xff] %v324_v42  ;;  %v354_v45 = vmul.f32 0.5, %v347_v43 }
 0x1d1   :  { %538 = vst [vmem:[#allocation17 + $0x8] sm:$0xff] %v347_v43 }
 0x1d2   :  { %v356_v47 = vmul.f32 1.442695, %v354_v45 }
 0x1d4   :  { %619 = vpow2.f32 %v356_v47 }
 0x1d5   :  { %v326_v49 = vpop.f32.mrf.mxu2  ;;  %v349_v50 = vpop.f32.mrf.mxu3 }
 0x1d6   :  { %v327_v52 = vadd.f32 %v326_v49, %v302_v36  ;;  %v350_v53 = vadd.f32 %v349_v50, %v303_v37  ;;  %v618_v37 = vld [vmem:[%s1070_s13] ss:$0 sm:$0xff]  ;;  %s898_s13 = smov [#allocation16]  }
 0x1d7   :  { %s545_s15 = sshll.u32 %s898_s13, 4  ;;  %s546_s15 = int_to_ptr.vmem [resolvable:$true] %s545_s15 }
 0x1d8   :  { %539 = vst [vmem:[#allocation17 + $0x10] sm:$0xff] %v327_v52  ;;  %v355_v55 = vmul.f32 0.5, %v350_v53 }
 0x1d9   :  { %540 = vst [vmem:[#allocation17 + $0x18] sm:$0xff] %v350_v53 }
 0x1da   :  { %v620_v58 = vpop.eup %619  ;;  %v358_v59 = vmul.f32 1.442695, %v355_v55  ;;  %566 = dma.vmem_to_hbm [thread:$0]  %s559_s16, 512, %s561_s18, [#allocation18], %s893_s1, %s893_s1, %s894_s4  }
 0x1db   :  { %v360_v60 = vmul.f32 %v620_v58, %v352_v56 }
 0x1dc   :  { %621 = vpow2.f32 %v358_v59 }
 0x1dd   :  { %v362_v62 = vadd.f32 %v360_v60, %v324_v42 }
 0x1df   :  { %400 = vmatmul.f32.vlgmr.msrb.gmra.mxu0 %v362_v62 }
 0x1e2   :  { %v622_v1 = vpop.eup %621 }
 0x1e3   :  { %v361_v2 = vmul.f32 %v622_v1, %v353_v0 }
 0x1e5   :  { %v363_v3 = vadd.f32 %v361_v2, %v327_v52 }
 0x1e7   :  { %403 = vmatmul.f32.vlgmr.msrb.gmra.mxu3 %v363_v3 }
 0x25c   :  { %v401_v16 = vpop.f32.mrf.mxu0 }
 0x25d   :  { %v402_v17 = vadd.f32 %v616_v13, %v401_v16 }
 0x25f   :  { %v407_v19 = vmax.f32 %v402_v17, 0.0 }
 0x261   :  { %445 = vmatmul.f32.vlgmr.msrb.gmra.mxu1 %v407_v19 }
 0x26a   :  { %v404_v24 = vpop.f32.mrf.mxu3 }
 0x26b   :  { %v405_v25 = vadd.f32 %v616_v13, %v404_v24 }
 0x26d   :  { %v408_v26 = vmax.f32 %v405_v25, 0.0 }
 0x26f   :  { %448 = vmatmul.f32.gmra.mxu1 %v408_v26 }
 0x2de   :  { %v446_v31 = vpop.f32.mrf.mxu1 }
 0x2df   :  { %v447_v32 = vadd.f32 %v617_v30, %v446_v31 }
 0x2e1   :  { %v452_v33 = vmax.f32 %v447_v32, 0.0 }
 0x2e3   :  { %490 = vmatmul.f32.vlgmr.msrb.gmra.mxu2 %v452_v33 }
 0x2ec   :  { %v449_v34 = vpop.f32.mrf.mxu1 }
 0x2ed   :  { %v450_v35 = vadd.f32 %v617_v30, %v449_v34 }
 0x2ef   :  { %v453_v36 = vmax.f32 %v450_v35, 0.0 }
 0x2f1   :  { %493 = vmatmul.f32.gmra.mxu2 %v453_v36 }
 0x366   :  { %v491_v38 = vpop.f32.mrf.mxu2 }
 0x367   :  { %v492_v39 = vadd.f32 %v618_v37, %v491_v38 }
 0x369   :  { %v582_v40 = vmul.f32 -1.442695, %v492_v39 }
 0x36b   :  { %623 = vpow2.f32 %v582_v40 }
 0x371   :  { %v624_v41 = vpop.eup %623 }
 0x372   :  { %v503_v42 = vadd.f32 1.0, %v624_v41 }
 0x374   :  { %625 = vrcp.f32 %v503_v42  ;;  %v494_v43 = vpop.f32.mrf.mxu2  ;;  %v516_v49 = vand.u32 2147483648, %v503_v42  ;;  %v514_v52 = vand.u32 2147483647, %v503_v42  ;;  %vm510_vm1 = vweird.f32 %v503_v42 }
 0x375   :  { %v495_v44 = vadd.f32 %v618_v37, %v494_v43 }
 0x376   :  { %v517_v55 = vor.u32 1.1754944e-38, %v516_v49  ;;  %vm515_vm3 = vcmp.eq.f32.partialorder %v514_v52, 8.507059e+37 }
 0x377   :  { %v583_v45 = vmul.f32 -1.442695, %v495_v44 }
 0x379   :  { %627 = vpow2.f32 %v583_v45 }
 0x37a   :  { %v626_v46 = vpop.eup %625 }
 0x37b   :  { %v506_v47 = vmul.f32 %v626_v46, %v503_v42  ;;  %vm511_vm0 = vweird.f32 %v626_v46 }
 0x37c   :  { %vm512_vm2 = vmor %vm510_vm1, %vm511_vm0 }
 0x37d   :  { %v507_v48 = vsub.f32 1.0, %v506_v47 }
 0x37f   :  { %v628_v50 = vpop.eup %627  ;;  %v508_v51 = vmul.f32 %v626_v46, %v507_v48 }
 0x380   :  { %v504_v53 = vadd.f32 1.0, %v628_v50 }
 0x381   :  { %v509_v54 = vadd.f32 %v626_v46, %v508_v51 }
 0x382   :  { %629 = vrcp.f32 %v504_v53  ;;  %v531_v61 = vand.u32 2147483648, %v504_v53  ;;  %v529_v63 = vand.u32 2147483647, %v504_v53  ;;  %vm525_vm5 = vweird.f32 %v504_v53 }
 0x383   :  { %v513_v56 = vsel %vm512_vm2, %v626_v46, %v509_v54 }
 0x384   :  { %v518_v57 = vsel %vm515_vm3, %v517_v55, %v513_v56  ;;  %v532_v1 = vor.u32 1.1754944e-38, %v531_v61  ;;  %vm530_vm7 = vcmp.eq.f32.partialorder %v529_v63, 8.507059e+37 }
 0x385   :  { %535 = vst [vmem:[#allocation16] sm:$0xff] %v518_v57 }
 0x388   :  { %v630_v58 = vpop.eup %629 }
 0x389   :  { %v521_v59 = vmul.f32 %v630_v58, %v504_v53  ;;  %vm526_vm4 = vweird.f32 %v630_v58 }
 0x38a   :  { %vm527_vm6 = vmor %vm525_vm5, %vm526_vm4 }
 0x38b   :  { %v522_v60 = vsub.f32 1.0, %v521_v59 }
 0x38d   :  { %v523_v62 = vmul.f32 %v630_v58, %v522_v60 }
 0x38f   :  { %v524_v0 = vadd.f32 %v630_v58, %v523_v62 }
 0x391   :  { %v528_v2 = vsel %vm527_vm6, %v630_v58, %v524_v0 }
 0x392   :  { %v533_v3 = vsel %vm530_vm7, %v532_v1, %v528_v2 }
 0x393   :  { %536 = vst [vmem:[#allocation16 + $0x8] sm:$0xff] %v533_v3 }
 0x394   :  { %553 = dma.vmem_to_hbm [thread:$0]  %s546_s15, 256, %s548_s19, [#allocation4], %s886_s26, %s886_s26, %s887_s27  }
 0x395   :  { %881 = dma.done.wait [#allocation4], 256  }
 0x396   :  { %882 = vsyncadd [#allocation4], 4294967040 }
 0x397   :  { %883 = dma.done.wait [#allocation18], 512  }
 0x398   :  { %884 = vsyncadd [#allocation18], 4294966784 }
 0x399   :  { %575 = vsyncpa [#allocation3], 1 }
 0x39a   :  { %576 = vsyncpa [#allocation6], 1 }
 0x39b   :  { %577 = vsyncpa [#allocation9], 1 }
 0x39c   :  { %578 = vsyncpa [#allocation12], 1 }
 0x39d   :  { %579 = vsyncpa [#allocation15], 1 }
 0x39e   :  { %580 = vsyncpa [#allocation4], 1 }
 0x39f   :  { %581 = vsyncpa [#allocation18], 1 }

</bundles_post_ra>
